<compile_context>
chip_gen: v7x
topology: tpu7x:2x2x1
jax: 0.10.0
libtpu: 0.0.40
codegen_flags: <defaults>
</compile_context>

<pallas_src>
import functools

import jax
import jax.numpy as jnp
from jax.experimental import pallas as pl
from jax.experimental.pallas import tpu as pltpu


def _conv_bn_act_conv_kernel(x_ref, mask_ref, w3_ref, wp_ref, shift_ref, *rest,
                             H, W, d, groups, cg, has_bias):
    # x_ref:     (1, G, cg, L)  input image, channels split per group, L = H*W
    # mask_ref:  (2, L)         bf16 column-validity masks (dc = -d / +d taps)
    # w3_ref:    (9, G, cg, cg) bf16 conv weights (BN scale folded) [tap, g, out, in]
    # wp_ref:    (G, C, cg)     bf16 1x1 projection weights, grouped on input chans
    # shift_ref: (G, cg, 1)     f32 folded BatchNorm shift
    # pbias_ref: (C, 1)         f32 projection bias (only when has_bias)
    # o_ref:     (1, C, L)      output
    # xq_ref:    (G, cg, Lq)    bf16 scratch: zero-framed staging buffer
    if has_bias:
        pbias_ref, o_ref, xq_ref = rest
    else:
        o_ref, xq_ref = rest

    C = groups * cg
    L = H * W
    pad = d * W + d  # widest dilated-tap offset -> zero frame on both sides

    # Stage the tile into the zero-framed scratch: all 9 dilated taps become
    # plain static-offset window reads; out-of-image rows land in the frame.
    xq_ref[...] = jnp.zeros_like(xq_ref)
    xq_ref[:, :, pad:pad + L] = x_ref[0].astype(xq_ref.dtype)

    mask_l = mask_ref[0:1, :]   # valid where j - d >= 0  (kw == 0 taps)
    mask_r = mask_ref[1:2, :]   # valid where j + d <  W  (kw == 2 taps)

    # 3x3 grouped dilated conv (BN scale folded into weights) + shift + ReLU,
    # accumulated per tap / per group on the MXU with f32 accumulation.
    h = []                                            # per-group bf16 activations
    for g in range(groups):
        acc = jnp.zeros((cg, L), jnp.float32)
        for kh in range(3):
            for kw in range(3):
                t = kh * 3 + kw
                off = pad + (kh - 1) * d * W + (kw - 1) * d
                tap = xq_ref[g, :, off:off + L]       # (cg, L) bf16
                if kw == 0:
                    tap = tap * mask_l                # exact {0,1} masks
                elif kw == 2:
                    tap = tap * mask_r
                acc = acc + jnp.dot(w3_ref[t, g], tap,
                                    preferred_element_type=jnp.float32)
        hg = jnp.maximum(acc + shift_ref[g], 0.0)     # f32 shift + ReLU
        h.append(hg.astype(jnp.bfloat16))             # cast at matmul boundary

    # 1x1 projection: y = sum_g wp[:, g-th input slice] @ h_g (f32 accumulate).
    y = jnp.zeros((C, L), jnp.float32)
    for g in range(groups):
        y = y + jnp.dot(wp_ref[g], h[g], preferred_element_type=jnp.float32)
    if has_bias:
        y = y + pbias_ref[...]
    o_ref[0] = y.astype(o_ref.dtype)


class ConvBnActConvPallas:
    """JAX/Pallas port of msdseg_net.blocks.ConvBnActConv (forward, inference)."""

    def __init__(self, w, stride, dilation, groups, bias, key, eps=1e-5):
        assert w % groups == 0
        self.w = int(w)
        self.stride = int(stride)
        self.d = int(dilation)
        self.groups = int(groups)
        self.cg = w // groups
        self.has_bias = bool(bias)
        self.eps = float(eps)

        cg = self.cg
        keys = jax.random.split(key, 7)
        # 3x3 grouped conv weight, PyTorch layout (out, in/groups, 3, 3), bias=False.
        self.w3 = (1.0 / jnp.sqrt(cg * 9.0)) * jax.random.normal(
            keys[0], (w, cg, 3, 3), jnp.float32)
        # BatchNorm2d parameters + running statistics (eval mode).
        self.gamma = 1.0 + 0.1 * jax.random.normal(keys[1], (w,), jnp.float32)
        self.beta = 0.1 * jax.random.normal(keys[2], (w,), jnp.float32)
        self.running_mean = 0.1 * jax.random.normal(keys[3], (w,), jnp.float32)
        self.running_var = 0.5 + jax.random.uniform(keys[4], (w,), jnp.float32)
        # 1x1 projection conv.
        self.wp = (1.0 / jnp.sqrt(float(w))) * jax.random.normal(
            keys[5], (w, w), jnp.float32)
        self.pbias = ((1.0 / jnp.sqrt(float(w))) * jax.random.normal(
            keys[6], (w,), jnp.float32)) if self.has_bias else None

        # ---- Fold into MXU-friendly bf16 operands (done once) ----------------
        scale = self.gamma / jnp.sqrt(self.running_var + self.eps)       # (w,)
        # Conv weights with BN scale folded (exact since the conv has no bias):
        #   w3g[t, g, i, j] = w3[g*cg+i, j, kh, kw] * scale[g*cg+i], t = kh*3+kw.
        w3s = self.w3 * scale[:, None, None, None]
        per_tap = jnp.transpose(w3s, (2, 3, 0, 1)).reshape(9, w, cg)
        self.w3g = per_tap.reshape(9, self.groups, cg, cg).astype(jnp.bfloat16)
        # Remaining BN shift, per group.
        self.bn_shift = (self.beta - self.running_mean * scale).reshape(
            self.groups, cg, 1)
        # 1x1 projection weights grouped along their *input* channels so the
        # kernel never slices sublanes: wp_g[g, o, j] = wp[o, g*cg + j].
        self.wp_g = jnp.transpose(self.wp.reshape(w, self.groups, cg),
                                  (1, 0, 2)).astype(jnp.bfloat16)
        self.pbias_col = self.pbias.reshape(w, 1) if self.has_bias else None

    def _col_masks(self, W, L):
        # Column-validity masks of the dc = -d / +d taps: in the flattened H*W
        # layout a dilated column shift must not wrap across a row boundary.
        j = jnp.arange(L, dtype=jnp.int32) % W
        return jnp.stack([(j >= self.d), (j < W - self.d)]).astype(jnp.bfloat16)

    def __call__(self, x):
        N, C, H, W = x.shape
        assert C == self.w
        G, cg, d = self.groups, self.cg, self.d
        L = H * W                      # lane-dense when H*W is a multiple of 128
        Lq = L + 2 * (d * W + d)       # zero frame for the widest dilated tap
        x_g = x.reshape(N, G, cg, L)   # free row-major reshape
        col_mask = self._col_masks(W, L)

        kernel = functools.partial(
            _conv_bn_act_conv_kernel, H=H, W=W, d=d, groups=G, cg=cg,
            has_bias=self.has_bias)

        operands = [x_g, col_mask, self.w3g, self.wp_g, self.bn_shift]
        # TODO(synk): grid-invariant operands below could be single-buffered via
        # pipeline_mode=pl.Buffered(1) once single-buffering is supported on the
        # deployed JAX version.
        in_specs = [
            pl.BlockSpec((1, G, cg, L), lambda n: (n, 0, 0, 0)),
            pl.BlockSpec((2, L), lambda n: (0, 0)),
            pl.BlockSpec((9, G, cg, cg), lambda n: (0, 0, 0, 0)),
            pl.BlockSpec((G, C, cg), lambda n: (0, 0, 0)),
            pl.BlockSpec((G, cg, 1), lambda n: (0, 0, 0)),
        ]
        if self.has_bias:
            operands.append(self.pbias_col)
            in_specs.append(pl.BlockSpec((C, 1), lambda n: (0, 0)))

        # TODO(synk): for large feature maps add an H-tile grid axis with a +/-d
        # row halo (manual DMA) so the per-step VMEM footprint stays bounded on
        # v7x's 64 MiB VMEM; whole-image blocks here are sized for small maps.
        y_flat = pl.pallas_call(
            kernel,
            out_shape=jax.ShapeDtypeStruct((N, C, L), x.dtype),
            grid=(N,),
            in_specs=in_specs,
            out_specs=pl.BlockSpec((1, C, L), lambda n: (n, 0, 0)),
            scratch_shapes=[pltpu.VMEM((G, cg, Lq), jnp.bfloat16)],
            compiler_params=pltpu.CompilerParams(
                dimension_semantics=("parallel",),
                vmem_limit_bytes=32 * 1024 * 1024),
        )(*operands)

        y = y_flat.reshape(N, C, H, W)
        if self.stride > 1:
            # BN/ReLU/1x1-conv are pointwise in space, so a full-resolution pass
            # followed by a strided slice is numerically exact.
            # TODO(synk): subsample in-kernel before the 1x1 projection to save
            # the stride^2 redundant projection FLOPs and output HBM writeback.
            y = y[:, :, ::self.stride, ::self.stride]
        return y

    def reference(self, x):
        """Pure-JAX (XLA) reference for verification (eval-mode BN)."""
        conv = jax.lax.conv_general_dilated(
            x, self.w3, window_strides=(self.stride, self.stride),
            padding=((self.d, self.d), (self.d, self.d)),
            rhs_dilation=(self.d, self.d),
            dimension_numbers=("NCHW", "OIHW", "NCHW"),
            feature_group_count=self.groups)
        bn = ((conv - self.running_mean[None, :, None, None]) /
              jnp.sqrt(self.running_var[None, :, None, None] + self.eps) *
              self.gamma[None, :, None, None] + self.beta[None, :, None, None])
        act = jnp.maximum(bn, 0.0)
        proj = jax.lax.conv_general_dilated(
            act, self.wp.reshape(self.w, self.w, 1, 1),
            window_strides=(1, 1), padding=((0, 0), (0, 0)),
            dimension_numbers=("NCHW", "OIHW", "NCHW"))
        if self.has_bias:
            proj = proj + self.pbias[None, :, None, None]
        return proj


if __name__ == "__main__":
    key = jax.random.PRNGKey(0)
    k_x, k_p = jax.random.split(key)

    # ConvBnActConv(w=8, stride=1, dilation=2, groups=2, bias=True)
    module = ConvBnActConvPallas(w=8, stride=1, dilation=2, groups=2,
                                 bias=True, key=k_p)

    x = jax.random.normal(k_x, (2, 8, 16, 16), jnp.float32)

    out = jax.block_until_ready(module(x))
    ref = jax.block_until_ready(module.reference(x))

    assert out.shape == ref.shape == (2, 8, 16, 16), (out.shape, ref.shape)
    # Tolerance sized for the intentional bf16 MXU operands (f32 accumulation)
    # vs. the all-f32 XLA reference path.
    max_err = float(jnp.max(jnp.abs(out - ref)))
    assert jnp.allclose(out, ref, atol=3e-2, rtol=2e-2), max_err

    print("KERNEL_OK")
</pallas_src>

<mosaic_0001>
module attributes {stable_mosaic.version = 11 : i64} {
  func.func @_conv_bn_act_conv_kernel(%arg0: i32, %arg1: memref<1x2x4x256xf32, #tpu.memory_space<vmem>>, %arg2: memref<2x256xbf16, #tpu.memory_space<vmem>>, %arg3: memref<9x2x4x4xbf16, #tpu.memory_space<vmem>>, %arg4: memref<2x8x4xbf16, #tpu.memory_space<vmem>>, %arg5: memref<2x4x1xf32, #tpu.memory_space<vmem>>, %arg6: memref<8x1xf32, #tpu.memory_space<vmem>>, %arg7: memref<1x8x256xf32, #tpu.memory_space<vmem>>, %arg8: memref<2x4x324xbf16, #tpu.memory_space<vmem>>) attributes {dimension_semantics = [#tpu.dimension_semantics<parallel>], iteration_bounds = array<i64: 2>, scalar_prefetch = 0 : i64, scratch_operands = 1 : i64, tpu.core_type = #tpu.core_type<tc>, window_params = [{transform_indices = @transform_0, window_bounds = array<i64: 1, 2, 4, 256>}, {pipeline_mode = #tpu.pipeline_mode<synchronous>, transform_indices = @transform_1, window_bounds = array<i64: 2, 256>}, {pipeline_mode = #tpu.pipeline_mode<synchronous>, transform_indices = @transform_2, window_bounds = array<i64: 9, 2, 4, 4>}, {pipeline_mode = #tpu.pipeline_mode<synchronous>, transform_indices = @transform_3, window_bounds = array<i64: 2, 8, 4>}, {pipeline_mode = #tpu.pipeline_mode<synchronous>, transform_indices = @transform_4, window_bounds = array<i64: 2, 4, 1>}, {pipeline_mode = #tpu.pipeline_mode<synchronous>, transform_indices = @transform_5, window_bounds = array<i64: 8, 1>}, {transform_indices = @transform_6, window_bounds = array<i64: 1, 8, 256>}]} {
    %cst = arith.constant 0.000000e+00 : bf16
    %0 = vector.broadcast %cst : bf16 to vector<2x4x324xbf16>
    %c0 = arith.constant 0 : index
    %c0_0 = arith.constant 0 : index
    %c0_1 = arith.constant 0 : index
    %1 = vector.load %arg8[%c0, %c0_0, %c0_1] : memref<2x4x324xbf16, #tpu.memory_space<vmem>>, vector<2x4x324xbf16>
    tpu.vector_store %arg8[%c0, %c0_0, %c0_1], %0 {strides = array<i32>} : memref<2x4x324xbf16, #tpu.memory_space<vmem>>, vector<2x4x324xbf16>,
    %c0_2 = arith.constant 0 : index
    %c0_3 = arith.constant 0 : index
    %c0_4 = arith.constant 0 : index
    %c0_5 = arith.constant 0 : index
    %2 = vector.load %arg1[%c0_2, %c0_3, %c0_4, %c0_5] : memref<1x2x4x256xf32, #tpu.memory_space<vmem>>, vector<1x2x4x256xf32>
    %3 = vector.shape_cast %2 : vector<1x2x4x256xf32> to vector<2x4x256xf32>
    %4 = arith.truncf %3 : vector<2x4x256xf32> to vector<2x4x256xbf16>
    %c0_6 = arith.constant 0 : index
    %c0_7 = arith.constant 0 : index
    %c34 = arith.constant 34 : index
    %5 = vector.load %arg8[%c0_6, %c0_7, %c34] : memref<2x4x324xbf16, #tpu.memory_space<vmem>>, vector<2x4x256xbf16>
    tpu.vector_store %arg8[%c0_6, %c0_7, %c34], %4 {strides = array<i32>} : memref<2x4x324xbf16, #tpu.memory_space<vmem>>, vector<2x4x256xbf16>,
    %c0_8 = arith.constant 0 : index
    %c0_9 = arith.constant 0 : index
    %6 = vector.load %arg2[%c0_8, %c0_9] : memref<2x256xbf16, #tpu.memory_space<vmem>>, vector<1x256xbf16>
    %c1 = arith.constant 1 : index
    %c0_10 = arith.constant 0 : index
    %7 = vector.load %arg2[%c1, %c0_10] : memref<2x256xbf16, #tpu.memory_space<vmem>>, vector<1x256xbf16>
    %cst_11 = arith.constant 0.000000e+00 : f32
    %8 = vector.broadcast %cst_11 : f32 to vector<4x256xf32>
    %c0_12 = arith.constant 0 : index
    %c0_13 = arith.constant 0 : index
    %c0_14 = arith.constant 0 : index
    %9 = vector.load %arg8[%c0_12, %c0_13, %c0_14] : memref<2x4x324xbf16, #tpu.memory_space<vmem>>, vector<1x4x256xbf16>
    %10 = vector.shape_cast %9 : vector<1x4x256xbf16> to vector<4x256xbf16>
    %11 = vector.broadcast %6 : vector<1x256xbf16> to vector<4x256xbf16>
    %12 = arith.mulf %10, %11 : vector<4x256xbf16>
    %c0_15 = arith.constant 0 : index
    %c0_16 = arith.constant 0 : index
    %c0_17 = arith.constant 0 : index
    %c0_18 = arith.constant 0 : index
    %13 = vector.load %arg3[%c0_15, %c0_16, %c0_17, %c0_18] : memref<9x2x4x4xbf16, #tpu.memory_space<vmem>>, vector<1x1x4x4xbf16>
    %14 = vector.shape_cast %13 : vector<1x1x4x4xbf16> to vector<4x4xbf16>
    %cst_19 = arith.constant dense<0.000000e+00> : vector<4x256xf32>
    %15 = tpu.matmul %14, %12, %cst_19 {dimension_numbers = #tpu.dot_dimension_numbers<[1], [0], [0], [1], [0, 0, 1, 1], [], []>} : vector<4x4xbf16>, vector<4x256xbf16>, vector<4x256xf32> -> vector<4x256xf32>
    %16 = arith.addf %8, %15 : vector<4x256xf32>
    %c0_20 = arith.constant 0 : index
    %c0_21 = arith.constant 0 : index
    %c2 = arith.constant 2 : index
    %17 = vector.load %arg8[%c0_20, %c0_21, %c2] : memref<2x4x324xbf16, #tpu.memory_space<vmem>>, vector<1x4x256xbf16>
    %18 = vector.shape_cast %17 : vector<1x4x256xbf16> to vector<4x256xbf16>
    %c1_22 = arith.constant 1 : index
    %c0_23 = arith.constant 0 : index
    %c0_24 = arith.constant 0 : index
    %c0_25 = arith.constant 0 : index
    %19 = vector.load %arg3[%c1_22, %c0_23, %c0_24, %c0_25] : memref<9x2x4x4xbf16, #tpu.memory_space<vmem>>, vector<1x1x4x4xbf16>
    %20 = vector.shape_cast %19 : vector<1x1x4x4xbf16> to vector<4x4xbf16>
    %cst_26 = arith.constant dense<0.000000e+00> : vector<4x256xf32>
    %21 = tpu.matmul %20, %18, %cst_26 {dimension_numbers = #tpu.dot_dimension_numbers<[1], [0], [0], [1], [0, 0, 1, 1], [], []>} : vector<4x4xbf16>, vector<4x256xbf16>, vector<4x256xf32> -> vector<4x256xf32>
    %22 = arith.addf %16, %21 : vector<4x256xf32>
    %c0_27 = arith.constant 0 : index
    %c0_28 = arith.constant 0 : index
    %c4 = arith.constant 4 : index
    %23 = vector.load %arg8[%c0_27, %c0_28, %c4] : memref<2x4x324xbf16, #tpu.memory_space<vmem>>, vector<1x4x256xbf16>
    %24 = vector.shape_cast %23 : vector<1x4x256xbf16> to vector<4x256xbf16>
    %25 = vector.broadcast %7 : vector<1x256xbf16> to vector<4x256xbf16>
    %26 = arith.mulf %24, %25 : vector<4x256xbf16>
    %c2_29 = arith.constant 2 : index
    %c0_30 = arith.constant 0 : index
    %c0_31 = arith.constant 0 : index
    %c0_32 = arith.constant 0 : index
    %27 = vector.load %arg3[%c2_29, %c0_30, %c0_31, %c0_32] : memref<9x2x4x4xbf16, #tpu.memory_space<vmem>>, vector<1x1x4x4xbf16>
    %28 = vector.shape_cast %27 : vector<1x1x4x4xbf16> to vector<4x4xbf16>
    %cst_33 = arith.constant dense<0.000000e+00> : vector<4x256xf32>
    %29 = tpu.matmul %28, %26, %cst_33 {dimension_numbers = #tpu.dot_dimension_numbers<[1], [0], [0], [1], [0, 0, 1, 1], [], []>} : vector<4x4xbf16>, vector<4x256xbf16>, vector<4x256xf32> -> vector<4x256xf32>
    %30 = arith.addf %22, %29 : vector<4x256xf32>
    %c0_34 = arith.constant 0 : index
    %c0_35 = arith.constant 0 : index
    %c32 = arith.constant 32 : index
    %31 = vector.load %arg8[%c0_34, %c0_35, %c32] : memref<2x4x324xbf16, #tpu.memory_space<vmem>>, vector<1x4x256xbf16>
    %32 = vector.shape_cast %31 : vector<1x4x256xbf16> to vector<4x256xbf16>
    %33 = vector.broadcast %6 : vector<1x256xbf16> to vector<4x256xbf16>
    %34 = arith.mulf %32, %33 : vector<4x256xbf16>
    %c3 = arith.constant 3 : index
    %c0_36 = arith.constant 0 : index
    %c0_37 = arith.constant 0 : index
    %c0_38 = arith.constant 0 : index
    %35 = vector.load %arg3[%c3, %c0_36, %c0_37, %c0_38] : memref<9x2x4x4xbf16, #tpu.memory_space<vmem>>, vector<1x1x4x4xbf16>
    %36 = vector.shape_cast %35 : vector<1x1x4x4xbf16> to vector<4x4xbf16>
    %cst_39 = arith.constant dense<0.000000e+00> : vector<4x256xf32>
    %37 = tpu.matmul %36, %34, %cst_39 {dimension_numbers = #tpu.dot_dimension_numbers<[1], [0], [0], [1], [0, 0, 1, 1], [], []>} : vector<4x4xbf16>, vector<4x256xbf16>, vector<4x256xf32> -> vector<4x256xf32>
    %38 = arith.addf %30, %37 : vector<4x256xf32>
    %c0_40 = arith.constant 0 : index
    %c0_41 = arith.constant 0 : index
    %c34_42 = arith.constant 34 : index
    %39 = vector.load %arg8[%c0_40, %c0_41, %c34_42] : memref<2x4x324xbf16, #tpu.memory_space<vmem>>, vector<1x4x256xbf16>
    %40 = vector.shape_cast %39 : vector<1x4x256xbf16> to vector<4x256xbf16>
    %c4_43 = arith.constant 4 : index
    %c0_44 = arith.constant 0 : index
    %c0_45 = arith.constant 0 : index
    %c0_46 = arith.constant 0 : index
    %41 = vector.load %arg3[%c4_43, %c0_44, %c0_45, %c0_46] : memref<9x2x4x4xbf16, #tpu.memory_space<vmem>>, vector<1x1x4x4xbf16>
    %42 = vector.shape_cast %41 : vector<1x1x4x4xbf16> to vector<4x4xbf16>
    %cst_47 = arith.constant dense<0.000000e+00> : vector<4x256xf32>
    %43 = tpu.matmul %42, %40, %cst_47 {dimension_numbers = #tpu.dot_dimension_numbers<[1], [0], [0], [1], [0, 0, 1, 1], [], []>} : vector<4x4xbf16>, vector<4x256xbf16>, vector<4x256xf32> -> vector<4x256xf32>
    %44 = arith.addf %38, %43 : vector<4x256xf32>
    %c0_48 = arith.constant 0 : index
    %c0_49 = arith.constant 0 : index
    %c36 = arith.constant 36 : index
    %45 = vector.load %arg8[%c0_48, %c0_49, %c36] : memref<2x4x324xbf16, #tpu.memory_space<vmem>>, vector<1x4x256xbf16>
    %46 = vector.shape_cast %45 : vector<1x4x256xbf16> to vector<4x256xbf16>
    %47 = vector.broadcast %7 : vector<1x256xbf16> to vector<4x256xbf16>
    %48 = arith.mulf %46, %47 : vector<4x256xbf16>
    %c5 = arith.constant 5 : index
    %c0_50 = arith.constant 0 : index
    %c0_51 = arith.constant 0 : index
    %c0_52 = arith.constant 0 : index
    %49 = vector.load %arg3[%c5, %c0_50, %c0_51, %c0_52] : memref<9x2x4x4xbf16, #tpu.memory_space<vmem>>, vector<1x1x4x4xbf16>
    %50 = vector.shape_cast %49 : vector<1x1x4x4xbf16> to vector<4x4xbf16>
    %cst_53 = arith.constant dense<0.000000e+00> : vector<4x256xf32>
    %51 = tpu.matmul %50, %48, %cst_53 {dimension_numbers = #tpu.dot_dimension_numbers<[1], [0], [0], [1], [0, 0, 1, 1], [], []>} : vector<4x4xbf16>, vector<4x256xbf16>, vector<4x256xf32> -> vector<4x256xf32>
    %52 = arith.addf %44, %51 : vector<4x256xf32>
    %c0_54 = arith.constant 0 : index
    %c0_55 = arith.constant 0 : index
    %c64 = arith.constant 64 : index
    %53 = vector.load %arg8[%c0_54, %c0_55, %c64] : memref<2x4x324xbf16, #tpu.memory_space<vmem>>, vector<1x4x256xbf16>
    %54 = vector.shape_cast %53 : vector<1x4x256xbf16> to vector<4x256xbf16>
    %55 = vector.broadcast %6 : vector<1x256xbf16> to vector<4x256xbf16>
    %56 = arith.mulf %54, %55 : vector<4x256xbf16>
    %c6 = arith.constant 6 : index
    %c0_56 = arith.constant 0 : index
    %c0_57 = arith.constant 0 : index
    %c0_58 = arith.constant 0 : index
    %57 = vector.load %arg3[%c6, %c0_56, %c0_57, %c0_58] : memref<9x2x4x4xbf16, #tpu.memory_space<vmem>>, vector<1x1x4x4xbf16>
    %58 = vector.shape_cast %57 : vector<1x1x4x4xbf16> to vector<4x4xbf16>
    %cst_59 = arith.constant dense<0.000000e+00> : vector<4x256xf32>
    %59 = tpu.matmul %58, %56, %cst_59 {dimension_numbers = #tpu.dot_dimension_numbers<[1], [0], [0], [1], [0, 0, 1, 1], [], []>} : vector<4x4xbf16>, vector<4x256xbf16>, vector<4x256xf32> -> vector<4x256xf32>
    %60 = arith.addf %52, %59 : vector<4x256xf32>
    %c0_60 = arith.constant 0 : index
    %c0_61 = arith.constant 0 : index
    %c66 = arith.constant 66 : index
    %61 = vector.load %arg8[%c0_60, %c0_61, %c66] : memref<2x4x324xbf16, #tpu.memory_space<vmem>>, vector<1x4x256xbf16>
    %62 = vector.shape_cast %61 : vector<1x4x256xbf16> to vector<4x256xbf16>
    %c7 = arith.constant 7 : index
    %c0_62 = arith.constant 0 : index
    %c0_63 = arith.constant 0 : index
    %c0_64 = arith.constant 0 : index
    %63 = vector.load %arg3[%c7, %c0_62, %c0_63, %c0_64] : memref<9x2x4x4xbf16, #tpu.memory_space<vmem>>, vector<1x1x4x4xbf16>
    %64 = vector.shape_cast %63 : vector<1x1x4x4xbf16> to vector<4x4xbf16>
    %cst_65 = arith.constant dense<0.000000e+00> : vector<4x256xf32>
    %65 = tpu.matmul %64, %62, %cst_65 {dimension_numbers = #tpu.dot_dimension_numbers<[1], [0], [0], [1], [0, 0, 1, 1], [], []>} : vector<4x4xbf16>, vector<4x256xbf16>, vector<4x256xf32> -> vector<4x256xf32>
    %66 = arith.addf %60, %65 : vector<4x256xf32>
    %c0_66 = arith.constant 0 : index
    %c0_67 = arith.constant 0 : index
    %c68 = arith.constant 68 : index
    %67 = vector.load %arg8[%c0_66, %c0_67, %c68] : memref<2x4x324xbf16, #tpu.memory_space<vmem>>, vector<1x4x256xbf16>
    %68 = vector.shape_cast %67 : vector<1x4x256xbf16> to vector<4x256xbf16>
    %69 = vector.broadcast %7 : vector<1x256xbf16> to vector<4x256xbf16>
    %70 = arith.mulf %68, %69 : vector<4x256xbf16>
    %c8 = arith.constant 8 : index
    %c0_68 = arith.constant 0 : index
    %c0_69 = arith.constant 0 : index
    %c0_70 = arith.constant 0 : index
    %71 = vector.load %arg3[%c8, %c0_68, %c0_69, %c0_70] : memref<9x2x4x4xbf16, #tpu.memory_space<vmem>>, vector<1x1x4x4xbf16>
    %72 = vector.shape_cast %71 : vector<1x1x4x4xbf16> to vector<4x4xbf16>
    %cst_71 = arith.constant dense<0.000000e+00> : vector<4x256xf32>
    %73 = tpu.matmul %72, %70, %cst_71 {dimension_numbers = #tpu.dot_dimension_numbers<[1], [0], [0], [1], [0, 0, 1, 1], [], []>} : vector<4x4xbf16>, vector<4x256xbf16>, vector<4x256xf32> -> vector<4x256xf32>
    %74 = arith.addf %66, %73 : vector<4x256xf32>
    %c0_72 = arith.constant 0 : index
    %c0_73 = arith.constant 0 : index
    %c0_74 = arith.constant 0 : index
    %75 = vector.load %arg5[%c0_72, %c0_73, %c0_74] : memref<2x4x1xf32, #tpu.memory_space<vmem>>, vector<1x4x1xf32>
    %76 = vector.shape_cast %75 : vector<1x4x1xf32> to vector<4x1xf32>
    %77 = vector.broadcast %76 : vector<4x1xf32> to vector<4x256xf32>
    %78 = arith.addf %74, %77 : vector<4x256xf32>
    %cst_75 = arith.constant 0.000000e+00 : f32
    %79 = vector.broadcast %cst_75 : f32 to vector<4x256xf32>
    %80 = arith.maximumf %78, %79 : vector<4x256xf32>
    %81 = arith.truncf %80 : vector<4x256xf32> to vector<4x256xbf16>
    %cst_76 = arith.constant 0.000000e+00 : f32
    %82 = vector.broadcast %cst_76 : f32 to vector<4x256xf32>
    %c1_77 = arith.constant 1 : index
    %c0_78 = arith.constant 0 : index
    %c0_79 = arith.constant 0 : index
    %83 = vector.load %arg8[%c1_77, %c0_78, %c0_79] : memref<2x4x324xbf16, #tpu.memory_space<vmem>>, vector<1x4x256xbf16>
    %84 = vector.shape_cast %83 : vector<1x4x256xbf16> to vector<4x256xbf16>
    %85 = vector.broadcast %6 : vector<1x256xbf16> to vector<4x256xbf16>
    %86 = arith.mulf %84, %85 : vector<4x256xbf16>
    %c0_80 = arith.constant 0 : index
    %c1_81 = arith.constant 1 : index
    %c0_82 = arith.constant 0 : index
    %c0_83 = arith.constant 0 : index
    %87 = vector.load %arg3[%c0_80, %c1_81, %c0_82, %c0_83] : memref<9x2x4x4xbf16, #tpu.memory_space<vmem>>, vector<1x1x4x4xbf16>
    %88 = vector.shape_cast %87 : vector<1x1x4x4xbf16> to vector<4x4xbf16>
    %cst_84 = arith.constant dense<0.000000e+00> : vector<4x256xf32>
    %89 = tpu.matmul %88, %86, %cst_84 {dimension_numbers = #tpu.dot_dimension_numbers<[1], [0], [0], [1], [0, 0, 1, 1], [], []>} : vector<4x4xbf16>, vector<4x256xbf16>, vector<4x256xf32> -> vector<4x256xf32>
    %90 = arith.addf %82, %89 : vector<4x256xf32>
    %c1_85 = arith.constant 1 : index
    %c0_86 = arith.constant 0 : index
    %c2_87 = arith.constant 2 : index
    %91 = vector.load %arg8[%c1_85, %c0_86, %c2_87] : memref<2x4x324xbf16, #tpu.memory_space<vmem>>, vector<1x4x256xbf16>
    %92 = vector.shape_cast %91 : vector<1x4x256xbf16> to vector<4x256xbf16>
    %c1_88 = arith.constant 1 : index
    %c1_89 = arith.constant 1 : index
    %c0_90 = arith.constant 0 : index
    %c0_91 = arith.constant 0 : index
    %93 = vector.load %arg3[%c1_88, %c1_89, %c0_90, %c0_91] : memref<9x2x4x4xbf16, #tpu.memory_space<vmem>>, vector<1x1x4x4xbf16>
    %94 = vector.shape_cast %93 : vector<1x1x4x4xbf16> to vector<4x4xbf16>
    %cst_92 = arith.constant dense<0.000000e+00> : vector<4x256xf32>
    %95 = tpu.matmul %94, %92, %cst_92 {dimension_numbers = #tpu.dot_dimension_numbers<[1], [0], [0], [1], [0, 0, 1, 1], [], []>} : vector<4x4xbf16>, vector<4x256xbf16>, vector<4x256xf32> -> vector<4x256xf32>
    %96 = arith.addf %90, %95 : vector<4x256xf32>
    %c1_93 = arith.constant 1 : index
    %c0_94 = arith.constant 0 : index
    %c4_95 = arith.constant 4 : index
    %97 = vector.load %arg8[%c1_93, %c0_94, %c4_95] : memref<2x4x324xbf16, #tpu.memory_space<vmem>>, vector<1x4x256xbf16>
    %98 = vector.shape_cast %97 : vector<1x4x256xbf16> to vector<4x256xbf16>
    %99 = vector.broadcast %7 : vector<1x256xbf16> to vector<4x256xbf16>
    %100 = arith.mulf %98, %99 : vector<4x256xbf16>
    %c2_96 = arith.constant 2 : index
    %c1_97 = arith.constant 1 : index
    %c0_98 = arith.constant 0 : index
    %c0_99 = arith.constant 0 : index
    %101 = vector.load %arg3[%c2_96, %c1_97, %c0_98, %c0_99] : memref<9x2x4x4xbf16, #tpu.memory_space<vmem>>, vector<1x1x4x4xbf16>
    %102 = vector.shape_cast %101 : vector<1x1x4x4xbf16> to vector<4x4xbf16>
    %cst_100 = arith.constant dense<0.000000e+00> : vector<4x256xf32>
    %103 = tpu.matmul %102, %100, %cst_100 {dimension_numbers = #tpu.dot_dimension_numbers<[1], [0], [0], [1], [0, 0, 1, 1], [], []>} : vector<4x4xbf16>, vector<4x256xbf16>, vector<4x256xf32> -> vector<4x256xf32>
    %104 = arith.addf %96, %103 : vector<4x256xf32>
    %c1_101 = arith.constant 1 : index
    %c0_102 = arith.constant 0 : index
    %c32_103 = arith.constant 32 : index
    %105 = vector.load %arg8[%c1_101, %c0_102, %c32_103] : memref<2x4x324xbf16, #tpu.memory_space<vmem>>, vector<1x4x256xbf16>
    %106 = vector.shape_cast %105 : vector<1x4x256xbf16> to vector<4x256xbf16>
    %107 = vector.broadcast %6 : vector<1x256xbf16> to vector<4x256xbf16>
    %108 = arith.mulf %106, %107 : vector<4x256xbf16>
    %c3_104 = arith.constant 3 : index
    %c1_105 = arith.constant 1 : index
    %c0_106 = arith.constant 0 : index
    %c0_107 = arith.constant 0 : index
    %109 = vector.load %arg3[%c3_104, %c1_105, %c0_106, %c0_107] : memref<9x2x4x4xbf16, #tpu.memory_space<vmem>>, vector<1x1x4x4xbf16>
    %110 = vector.shape_cast %109 : vector<1x1x4x4xbf16> to vector<4x4xbf16>
    %cst_108 = arith.constant dense<0.000000e+00> : vector<4x256xf32>
    %111 = tpu.matmul %110, %108, %cst_108 {dimension_numbers = #tpu.dot_dimension_numbers<[1], [0], [0], [1], [0, 0, 1, 1], [], []>} : vector<4x4xbf16>, vector<4x256xbf16>, vector<4x256xf32> -> vector<4x256xf32>
    %112 = arith.addf %104, %111 : vector<4x256xf32>
    %c1_109 = arith.constant 1 : index
    %c0_110 = arith.constant 0 : index
    %c34_111 = arith.constant 34 : index
    %113 = vector.load %arg8[%c1_109, %c0_110, %c34_111] : memref<2x4x324xbf16, #tpu.memory_space<vmem>>, vector<1x4x256xbf16>
    %114 = vector.shape_cast %113 : vector<1x4x256xbf16> to vector<4x256xbf16>
    %c4_112 = arith.constant 4 : index
    %c1_113 = arith.constant 1 : index
    %c0_114 = arith.constant 0 : index
    %c0_115 = arith.constant 0 : index
    %115 = vector.load %arg3[%c4_112, %c1_113, %c0_114, %c0_115] : memref<9x2x4x4xbf16, #tpu.memory_space<vmem>>, vector<1x1x4x4xbf16>
    %116 = vector.shape_cast %115 : vector<1x1x4x4xbf16> to vector<4x4xbf16>
    %cst_116 = arith.constant dense<0.000000e+00> : vector<4x256xf32>
    %117 = tpu.matmul %116, %114, %cst_116 {dimension_numbers = #tpu.dot_dimension_numbers<[1], [0], [0], [1], [0, 0, 1, 1], [], []>} : vector<4x4xbf16>, vector<4x256xbf16>, vector<4x256xf32> -> vector<4x256xf32>
    %118 = arith.addf %112, %117 : vector<4x256xf32>
    %c1_117 = arith.constant 1 : index
    %c0_118 = arith.constant 0 : index
    %c36_119 = arith.constant 36 : index
    %119 = vector.load %arg8[%c1_117, %c0_118, %c36_119] : memref<2x4x324xbf16, #tpu.memory_space<vmem>>, vector<1x4x256xbf16>
    %120 = vector.shape_cast %119 : vector<1x4x256xbf16> to vector<4x256xbf16>
    %121 = vector.broadcast %7 : vector<1x256xbf16> to vector<4x256xbf16>
    %122 = arith.mulf %120, %121 : vector<4x256xbf16>
    %c5_120 = arith.constant 5 : index
    %c1_121 = arith.constant 1 : index
    %c0_122 = arith.constant 0 : index
    %c0_123 = arith.constant 0 : index
    %123 = vector.load %arg3[%c5_120, %c1_121, %c0_122, %c0_123] : memref<9x2x4x4xbf16, #tpu.memory_space<vmem>>, vector<1x1x4x4xbf16>
    %124 = vector.shape_cast %123 : vector<1x1x4x4xbf16> to vector<4x4xbf16>
    %cst_124 = arith.constant dense<0.000000e+00> : vector<4x256xf32>
    %125 = tpu.matmul %124, %122, %cst_124 {dimension_numbers = #tpu.dot_dimension_numbers<[1], [0], [0], [1], [0, 0, 1, 1], [], []>} : vector<4x4xbf16>, vector<4x256xbf16>, vector<4x256xf32> -> vector<4x256xf32>
    %126 = arith.addf %118, %125 : vector<4x256xf32>
    %c1_125 = arith.constant 1 : index
    %c0_126 = arith.constant 0 : index
    %c64_127 = arith.constant 64 : index
    %127 = vector.load %arg8[%c1_125, %c0_126, %c64_127] : memref<2x4x324xbf16, #tpu.memory_space<vmem>>, vector<1x4x256xbf16>
    %128 = vector.shape_cast %127 : vector<1x4x256xbf16> to vector<4x256xbf16>
    %129 = vector.broadcast %6 : vector<1x256xbf16> to vector<4x256xbf16>
    %130 = arith.mulf %128, %129 : vector<4x256xbf16>
    %c6_128 = arith.constant 6 : index
    %c1_129 = arith.constant 1 : index
    %c0_130 = arith.constant 0 : index
    %c0_131 = arith.constant 0 : index
    %131 = vector.load %arg3[%c6_128, %c1_129, %c0_130, %c0_131] : memref<9x2x4x4xbf16, #tpu.memory_space<vmem>>, vector<1x1x4x4xbf16>
    %132 = vector.shape_cast %131 : vector<1x1x4x4xbf16> to vector<4x4xbf16>
    %cst_132 = arith.constant dense<0.000000e+00> : vector<4x256xf32>
    %133 = tpu.matmul %132, %130, %cst_132 {dimension_numbers = #tpu.dot_dimension_numbers<[1], [0], [0], [1], [0, 0, 1, 1], [], []>} : vector<4x4xbf16>, vector<4x256xbf16>, vector<4x256xf32> -> vector<4x256xf32>
    %134 = arith.addf %126, %133 : vector<4x256xf32>
    %c1_133 = arith.constant 1 : index
    %c0_134 = arith.constant 0 : index
    %c66_135 = arith.constant 66 : index
    %135 = vector.load %arg8[%c1_133, %c0_134, %c66_135] : memref<2x4x324xbf16, #tpu.memory_space<vmem>>, vector<1x4x256xbf16>
    %136 = vector.shape_cast %135 : vector<1x4x256xbf16> to vector<4x256xbf16>
    %c7_136 = arith.constant 7 : index
    %c1_137 = arith.constant 1 : index
    %c0_138 = arith.constant 0 : index
    %c0_139 = arith.constant 0 : index
    %137 = vector.load %arg3[%c7_136, %c1_137, %c0_138, %c0_139] : memref<9x2x4x4xbf16, #tpu.memory_space<vmem>>, vector<1x1x4x4xbf16>
    %138 = vector.shape_cast %137 : vector<1x1x4x4xbf16> to vector<4x4xbf16>
    %cst_140 = arith.constant dense<0.000000e+00> : vector<4x256xf32>
    %139 = tpu.matmul %138, %136, %cst_140 {dimension_numbers = #tpu.dot_dimension_numbers<[1], [0], [0], [1], [0, 0, 1, 1], [], []>} : vector<4x4xbf16>, vector<4x256xbf16>, vector<4x256xf32> -> vector<4x256xf32>
    %140 = arith.addf %134, %139 : vector<4x256xf32>
    %c1_141 = arith.constant 1 : index
    %c0_142 = arith.constant 0 : index
    %c68_143 = arith.constant 68 : index
    %141 = vector.load %arg8[%c1_141, %c0_142, %c68_143] : memref<2x4x324xbf16, #tpu.memory_space<vmem>>, vector<1x4x256xbf16>
    %142 = vector.shape_cast %141 : vector<1x4x256xbf16> to vector<4x256xbf16>
    %143 = vector.broadcast %7 : vector<1x256xbf16> to vector<4x256xbf16>
    %144 = arith.mulf %142, %143 : vector<4x256xbf16>
    %c8_144 = arith.constant 8 : index
    %c1_145 = arith.constant 1 : index
    %c0_146 = arith.constant 0 : index
    %c0_147 = arith.constant 0 : index
    %145 = vector.load %arg3[%c8_144, %c1_145, %c0_146, %c0_147] : memref<9x2x4x4xbf16, #tpu.memory_space<vmem>>, vector<1x1x4x4xbf16>
    %146 = vector.shape_cast %145 : vector<1x1x4x4xbf16> to vector<4x4xbf16>
    %cst_148 = arith.constant dense<0.000000e+00> : vector<4x256xf32>
    %147 = tpu.matmul %146, %144, %cst_148 {dimension_numbers = #tpu.dot_dimension_numbers<[1], [0], [0], [1], [0, 0, 1, 1], [], []>} : vector<4x4xbf16>, vector<4x256xbf16>, vector<4x256xf32> -> vector<4x256xf32>
    %148 = arith.addf %140, %147 : vector<4x256xf32>
    %c1_149 = arith.constant 1 : index
    %c0_150 = arith.constant 0 : index
    %c0_151 = arith.constant 0 : index
    %149 = vector.load %arg5[%c1_149, %c0_150, %c0_151] : memref<2x4x1xf32, #tpu.memory_space<vmem>>, vector<1x4x1xf32>
    %150 = vector.shape_cast %149 : vector<1x4x1xf32> to vector<4x1xf32>
    %151 = vector.broadcast %150 : vector<4x1xf32> to vector<4x256xf32>
    %152 = arith.addf %148, %151 : vector<4x256xf32>
    %cst_152 = arith.constant 0.000000e+00 : f32
    %153 = vector.broadcast %cst_152 : f32 to vector<4x256xf32>
    %154 = arith.maximumf %152, %153 : vector<4x256xf32>
    %155 = arith.truncf %154 : vector<4x256xf32> to vector<4x256xbf16>
    %cst_153 = arith.constant 0.000000e+00 : f32
    %156 = vector.broadcast %cst_153 : f32 to vector<8x256xf32>
    %c0_154 = arith.constant 0 : index
    %c0_155 = arith.constant 0 : index
    %c0_156 = arith.constant 0 : index
    %157 = vector.load %arg4[%c0_154, %c0_155, %c0_156] : memref<2x8x4xbf16, #tpu.memory_space<vmem>>, vector<1x8x4xbf16>
    %158 = vector.shape_cast %157 : vector<1x8x4xbf16> to vector<8x4xbf16>
    %cst_157 = arith.constant dense<0.000000e+00> : vector<8x256xf32>
    %159 = tpu.matmul %158, %81, %cst_157 {dimension_numbers = #tpu.dot_dimension_numbers<[1], [0], [0], [1], [0, 0, 1, 1], [], []>} : vector<8x4xbf16>, vector<4x256xbf16>, vector<8x256xf32> -> vector<8x256xf32>
    %160 = arith.addf %156, %159 : vector<8x256xf32>
    %c1_158 = arith.constant 1 : index
    %c0_159 = arith.constant 0 : index
    %c0_160 = arith.constant 0 : index
    %161 = vector.load %arg4[%c1_158, %c0_159, %c0_160] : memref<2x8x4xbf16, #tpu.memory_space<vmem>>, vector<1x8x4xbf16>
    %162 = vector.shape_cast %161 : vector<1x8x4xbf16> to vector<8x4xbf16>
    %cst_161 = arith.constant dense<0.000000e+00> : vector<8x256xf32>
    %163 = tpu.matmul %162, %155, %cst_161 {dimension_numbers = #tpu.dot_dimension_numbers<[1], [0], [0], [1], [0, 0, 1, 1], [], []>} : vector<8x4xbf16>, vector<4x256xbf16>, vector<8x256xf32> -> vector<8x256xf32>
    %164 = arith.addf %160, %163 : vector<8x256xf32>
    %c0_162 = arith.constant 0 : index
    %c0_163 = arith.constant 0 : index
    %165 = vector.load %arg6[%c0_162, %c0_163] : memref<8x1xf32, #tpu.memory_space<vmem>>, vector<8x1xf32>
    %166 = vector.broadcast %165 : vector<8x1xf32> to vector<8x256xf32>
    %167 = arith.addf %164, %166 : vector<8x256xf32>
    %c0_164 = arith.constant 0 : index
    %c0_165 = arith.constant 0 : index
    %c0_166 = arith.constant 0 : index
    %168 = vector.load %arg7[%c0_164, %c0_165, %c0_166] : memref<1x8x256xf32, #tpu.memory_space<vmem>>, vector<1x8x256xf32>
    %169 = vector.shape_cast %168 : vector<1x8x256xf32> to vector<8x256xf32>
    %170 = vector.shape_cast %167 : vector<8x256xf32> to vector<1x8x256xf32>
    tpu.vector_store %arg7[%c0_164, %c0_165, %c0_166], %170 {strides = array<i32>} : memref<1x8x256xf32, #tpu.memory_space<vmem>>, vector<1x8x256xf32>,
    return
  }
  func.func @transform_0(%arg0: i32) -> (i32, i32, i32, i32) {
    %c0_i32 = arith.constant 0 : i32
    %c0_i32_0 = arith.constant 0 : i32
    %c0_i32_1 = arith.constant 0 : i32
    %c0_i32_2 = arith.constant 0 : i32
    return %arg0, %c0_i32, %c0_i32_0, %c0_i32_1 : i32, i32, i32, i32
  }
  func.func @transform_1(%arg0: i32) -> (i32, i32) {
    %c0_i32 = arith.constant 0 : i32
    %c0_i32_0 = arith.constant 0 : i32
    %c0_i32_1 = arith.constant 0 : i32
    return %c0_i32, %c0_i32_0 : i32, i32
  }
  func.func @transform_2(%arg0: i32) -> (i32, i32, i32, i32) {
    %c0_i32 = arith.constant 0 : i32
    %c0_i32_0 = arith.constant 0 : i32
    %c0_i32_1 = arith.constant 0 : i32
    %c0_i32_2 = arith.constant 0 : i32
    %c0_i32_3 = arith.constant 0 : i32
    return %c0_i32, %c0_i32_0, %c0_i32_1, %c0_i32_2 : i32, i32, i32, i32
  }
  func.func @transform_3(%arg0: i32) -> (i32, i32, i32) {
    %c0_i32 = arith.constant 0 : i32
    %c0_i32_0 = arith.constant 0 : i32
    %c0_i32_1 = arith.constant 0 : i32
    %c0_i32_2 = arith.constant 0 : i32
    return %c0_i32, %c0_i32_0, %c0_i32_1 : i32, i32, i32
  }
  func.func @transform_4(%arg0: i32) -> (i32, i32, i32) {
    %c0_i32 = arith.constant 0 : i32
    %c0_i32_0 = arith.constant 0 : i32
    %c0_i32_1 = arith.constant 0 : i32
    %c0_i32_2 = arith.constant 0 : i32
    return %c0_i32, %c0_i32_0, %c0_i32_1 : i32, i32, i32
  }
  func.func @transform_5(%arg0: i32) -> (i32, i32) {
    %c0_i32 = arith.constant 0 : i32
    %c0_i32_0 = arith.constant 0 : i32
    %c0_i32_1 = arith.constant 0 : i32
    return %c0_i32, %c0_i32_0 : i32, i32
  }
  func.func @transform_6(%arg0: i32) -> (i32, i32, i32) {
    %c0_i32 = arith.constant 0 : i32
    %c0_i32_0 = arith.constant 0 : i32
    %c0_i32_1 = arith.constant 0 : i32
    return %arg0, %c0_i32, %c0_i32_0 : i32, i32, i32
  }
}

</mosaic_0001>

<bundles_post_ra>
// kernel: tpu_custom_call.1
= control target key start
LH: loop header
LB: loop body
LE: loop exit
PB: predicated region body
PF: predicated region fallthrough
CT: control target
= control target key end

     0   :  { %11 = vsyncpa [#allocation4], 0  ;;  %s2770_s0 = inlined_call_operand.vmem [shape: f32[2,2,4,256], index: 0, kind: input, shape index: {}]   ;;  %s2771_s1 = inlined_call_operand.vmem [shape: bf16[2,256], index: 1, kind: input, shape index: {}]   ;;  %s2772_s2 = inlined_call_operand.vmem [shape: bf16[9,2,4,4], index: 2, kind: input, shape index: {}]   ;;  %s2773_s3 = inlined_call_operand.vmem [shape: bf16[2,8,4], index: 3, kind: input, shape index: {}]   ;;  %s2774_s4 = inlined_call_operand.vmem [shape: f32[2,4,1], index: 4, kind: input, shape index: {}]   ;;  %s2775_s5 = inlined_call_operand.vmem [shape: f32[8,1], index: 5, kind: input, shape index: {}]   ;;  %s2776_s6 = inlined_call_operand.hbm [shape: f32[2,8,256], index: 6, kind: output, shape index: {}]  }
   0x1   :  { %13 = vsyncpa [#allocation4 + $0x1], 0  ;;  %s2299_s21 = smov 0   ;;  %s2301_s22 = smov 0  }
   0x2   :  { %s2303_s23 = smov 0   ;;  %s2305_s24 = smov 0  }
   0x3 LB: > { %s2320_s25 = sadd.s32 4294967295, %s2245_s24   ;;  %s2042_s26 = sadd.s32 4294967294, %s2245_s24   ;;  %s2245_s24 = sphi %s2305_s24, %s2784_s24   ;;  %s2241_s23 = sphi %s2303_s23, %s2783_s23   ;;  %s2237_s22 = sphi %s2301_s22, %s2782_s22   ;;  %s2233_s21 = sphi %s2299_s21, %s2781_s21  }
   0x4   : > { %s2324_s27 = sadd.s32 1, %s2245_s24   ;;  %s157_s28 = sadd.s32 1, %s2241_s23 }
   0x5   : > { %s154_s29 = ssub.s32 %s2245_s24, %s2324_s27  ;;  %p167_p0 = scmp.ne.s32.totalorder %s2241_s23, %s2237_s22 }
   0x6   : > { %p155_p1 = scmp.eq.s32.totalorder %s154_s29, 0  ;;  %p168_p2 = scmp.eq.s32.totalorder %s2320_s25, 1 }
   0x7   : > { %p173_p3 = scmp.ne.s32.totalorder %s2237_s22, %s2233_s21  ;;  %p174_p4 = scmp.eq.s32.totalorder %s2042_s26, 1 }
   0x8   : > { %s2335_s30 = scalar_select %p155_p1, %s2241_s23, %s157_s28  }
   0x9   : > { %p2337_p5 = por %p168_p2, %p167_p0  ;;  %p2341_p6 = por %p174_p4, %p173_p3 }
   0xa   : > { %p2045_p7 = scmp.ge.s32.totalorder %s2245_s24, 1  ;;  %p215_p8 = scmp.lt.s32.totalorder %s2245_s24, 3 }
   0xc   : > { %p216_p9 = pnand %p2045_p7, %p215_p8 }
   0xd   : > { %p245_p10 = scmp.lt.s32.totalorder (!%p216_p9), %s2320_s25, 1  ;;  %v278_v0 = vlaneseq (!%p216_p9)  ;;  %v2247_v1 = vmov (!%p216_p9), 1983009808   ;;  %v2248_v4 = vmov (!%p216_p9), 1966171168   ;;  %vm251_vm0 = vcmask (!%p216_p9), 1041408  }
   0xe   : > { %219 = sbr.rel (%p216_p9) target bundleno = 829 (0x33d), region = 44  ;;  %v276_v2 = vunpack.c.l.s4 (!%p216_p9), %v2247_v1  ;;  %v2051_v3 = vld.sshfl [vmem:[%s2771_s1] sm:$0x11 pattern:$0x75316420] (!%p216_p9)  ;;  %v319_v5 = vunpack.c.l.s4 (!%p216_p9), %v2248_v4  ;;  %vm252_vm1 = vcmask (!%p216_p9), 1043458  }
   0xf   : > { %v279_v6 = vshrl.u32 (!%p216_p9), %v278_v0, 7  ;;  %v317_v7 = vcombine.high (!%p216_p9), %v2051_v3, %v2051_v3  ;;  %vm253_vm2 = vmor (!%p216_p9), %vm252_vm1, %vm251_vm0  ;;  %vm254_vm3 = vcmask (!%p216_p9), 553988   ;;  %v2249_v10 = vmov (!%p216_p9), 0   ;;  %s2250_s16 = smov (!%p216_p9), 34   ;;  %s2251_s17 = smov (!%p216_p9), 32  }
  0x10   : > { %v277_v8 = vunpack.c.0.s8 (!%p216_p9), %v276_v2  ;;  %v320_v9 = vunpack.c.0.s8 (!%p216_p9), %v319_v5  ;;  %vm255_vm4 = vmor (!%p216_p9), %vm254_vm3, %vm253_vm2  ;;  %430 = vmatprep.mubr.bf16.mxu0 (!%p216_p9), %v2249_v10  ;;  %489 = vmatprep.mubr.bf16.mxu1 (!%p216_p9), %v2249_v10  ;;  %s2252_s18 = smov (!%p216_p9), 4   ;;  %s2253_s19 = smov (!%p216_p9), 36   ;;  %vm301_vm5 = vcmask (!%p216_p9), 1041680   ;;  %vm303_vm7 = vcmask (!%p216_p9), 275460  }
  0x11   : > { %256 = vst.msk [vmem:[#allocation2] sm:$0x3f] (!%p216_p9), %vm255_vm4, %v2249_v10  ;;  %257 = vst.msk [vmem:[#allocation2 + $0x6] sm:$0x3f] (!%p216_p9), %vm255_vm4, %v2249_v10  ;;  %2173 = vset.pattern.permute.xlu1 (!%p216_p9), %v2249_v10  ;;  %2174 = vset.pattern.permute.xlu0 (!%p216_p9), %v2249_v10  ;;  %v337_v13 = vsub.s32 (!%p216_p9), 0, %v279_v6  ;;  %s2254_s20 = smov (!%p216_p9), 64  }
  0x12   : > { %v323_v11 = vsub.s32 (!%p216_p9), %v320_v9, %v279_v6  ;;  %v2363_v15 = vsub.s32 (!%p216_p9), %v277_v8, %v279_v6  ;;  %s2255_s26 = smov (!%p216_p9), 68   ;;  %vm302_vm6 = vmor (!%p216_p9), %vm252_vm1, %vm301_vm5  ;;  %vm296_vm8 = vcmask (!%p216_p9), 277504   ;;  %vm388_vm10 = vcmask (!%p216_p9), 31744   ;;  %s2256_s28 = smov (!%p216_p9), 94  }
  0x13   : > { %vm2375_vm9 = vmor (!%p216_p9), %vm303_vm7, %vm302_vm6  ;;  %s2257_s29 = smov (!%p216_p9), 126   ;;  %vm871_vm11 = vcmask (!%p216_p9), 523264   ;;  %s2258_s9 = smov (!%p216_p9), 62   ;;  %vm614_vm12 = vcmask (!%p216_p9), 261120   ;;  %vm1039_vm13 = vcmask (!%p216_p9), 556032   ;;  %vm783_vm14 = vcmask (!%p216_p9), 293888  }
  0x14   : > { %v324_v16 = vrot.slane (!%p216_p9), %v2051_v3, %v323_v11  ;;  %v331_v17 = vrot.slane (!%p216_p9), %v317_v7, %v323_v11  ;;  %s2259_s10 = smov (!%p216_p9), 124   ;;  %s2260_s13 = smov (!%p216_p9), 96   ;;  %vm385_vm15 = vcmask (!%p216_p9), 1031168   ;;  %vm555_vm1 = vcmask (!%p216_p9), 1014784  }
  0x15   : > { %s246_s11 = scalar_select %p245_p10, %s2320_s25, 1  ;;  %vm724_vm2 = vcmask 769024   ;;  %vm643_vm3 = vcmask 785408   ;;  %vm812_vm4 = vcmask 752640   ;;  %vm980_vm5 = vcmask 506880  }
  0x16   : > { %v333_v19 = vpack.i.b16 %v324_v16, %v324_v16  ;;  %v340_v20 = vpack.i.b16 %v331_v17, %v331_v17  ;;  %v499_v21 = vshrl.u32 %v324_v16, 16  ;;  %v506_v23 = vshrl.u32 %v331_v17, 16  ;;  %s2261_s14 = smov 60  }
  0x17   : > { %s2116_s12 = sshll.u32 %s246_s11, 4  ;;  %vm1068_vm6 = vcmask 490496  }
  0x18   : > { %s249_s15 = scalar_lea.vmem %s2770_s0, %s2116_s12  ;;  %v338_v25 = vrot.slane %v333_v19, %v337_v13  ;;  %v345_v26 = vrot.slane %v340_v20, %v337_v13  ;;  %v500_v27 = vpack.i.b16 %v499_v21, %v499_v21  ;;  %v507_v28 = vpack.i.b16 %v506_v23, %v506_v23 }
  0x19   : > { %v258_v12 = vld [vmem:[%s249_s15] sm:$0xff]  ;;  %v259_v22 = vld [vmem:[%s249_s15 + $0x8] sm:$0xff]  ;;  %s2262_s15 = smov 92  }
  0x1a   : > { %v262_v14 = vcombine.high %v258_v12, %v258_v12  ;;  %v263_v29 = vcombine.high %v259_v22, %v259_v22  ;;  %v348_v30 = vcombine.low %v338_v25, %v345_v26  ;;  %v505_v31 = vrot.slane %v500_v27, %v337_v13 }
  0x1b   : > { %v512_v32 = vrot.slane %v507_v28, %v337_v13 }
  0x1c   : > { %v2049_v18 = vpack.c.bf16 %v262_v14, %v258_v12  ;;  %v2367_v33 = vrot.slane %v348_v30, %v2363_v15  ;;  %v2050_v35 = vpack.c.bf16 %v263_v29, %v259_v22  ;;  %v358_v29 = vld [vmem:[%s2772_s2] sm:$0x3] }
  0x1d   : > { %v515_v34 = vcombine.low %v505_v31, %v512_v32 }
  0x1e   : > { %v281_v24 = vrot.slane %v2049_v18, %v2363_v15  ;;  %611 = vrot.lane.b32.xlu1 %v2367_v33, %s2251_s17  ;;  %v289_v37 = vrot.slane %v2050_v35, %v2363_v15  ;;  %s2117_s17 = sshll.u32 %s2320_s25, 8 }
  0x1f   : > { %v522_v36 = vrot.slane %v515_v34, %v2363_v15 }
  0x20   : > { %290 = vrot.lane.b32.xlu0 %v281_v24, %s2250_s16 }
  0x22   : > { %780 = vrot.lane.b32.xlu1 %v522_v36, %s2253_s19 }
  0x24   : > { %523 = vrot.lane.b32.xlu0 %v522_v36, %s2252_s18 }
  0x26   : > { %292 = vrot.lane.b32.xlu1 %v289_v37, %s2250_s16 }
  0x28   : > { %868 = vrot.lane.b32.xlu0 %v2367_v33, %s2254_s20 }
  0x2c   : > { %1036 = vrot.lane.b32.xlu0 %v522_v36, %s2255_s26 }
  0x90   : > { %v612_v42 = vpop.permute.xlu1 %611 }
  0x91   : > { %v613_v6 = vrot.slane %v612_v42, 6 }
  0x92   : > { %v291_v38 = vpop.permute.xlu0 %290 }
  0x93   : > { %v294_v40 = vrot.slane %v291_v38, 6  ;;  %v2428_v17 = vsel %vm614_vm12, %v613_v6, %v612_v42 }
  0x94   : > { %v2382_v43 = vpop.permute.xlu1 %780 }
  0x95   : > { %v297_v41 = vsel %vm296_vm8, %v294_v40, %v291_v38  ;;  %v782_v20 = vrot.slane %v2382_v43, 6 }
  0x96   : > { %305 = vst.msk [vmem:[#allocation2] sm:$0x3f] %vm2375_vm9, %v297_v41  ;;  %v524_v44 = vpop.permute.xlu0 %523 }
  0x97   : > { %v525_v45 = vrot.slane %v524_v44, 6  ;;  %v2442_v26 = vsel %vm783_vm14, %v782_v20, %v2382_v43 }
  0x98   : > { %v293_v46 = vpop.permute.xlu1 %292 }
  0x99   : > { %v295_v48 = vrot.slane %v293_v46, 6  ;;  %v2388_v52 = vsel %vm388_vm10, %v525_v45, %v524_v44 }
  0x9a   : > { %v869_v54 = vpop.permute.xlu0 %868 }
  0x9b   : > { %v298_v55 = vsel %vm296_vm8, %v295_v48, %v293_v46  ;;  %v870_v61 = vrot.slane %v869_v54, 6 }
  0x9c   : > { %306 = vst.msk [vmem:[#allocation2 + $0x6] sm:$0x3f] %vm2375_vm9, %v298_v55 }
  0x9d   : > { %v698_v47 = vld [vmem:[#allocation2] sm:$0x3f]  ;;  %v2414_v5 = vsel %vm871_vm11, %v870_v61, %v869_v54 }
  0x9e   : > { %v2385_v49 = vrot.slane %v698_v47, %v2363_v15  ;;  %v359_v50 = vld [vmem:[#allocation2] sm:$0x3f]  ;;  %v702_v3 = vcombine.high %v698_v47, %v698_v47  ;;  %v1037_v7 = vpop.permute.xlu0 %1036 }
  0x9f   : > { %v498_v51 = vld [vmem:[#allocation2] sm:$0x3f]  ;;  %v370_v56 = vrot.slane %v359_v50, %v2363_v15  ;;  %v363_v11 = vcombine.high %v359_v50, %v359_v50  ;;  %v1038_v16 = vrot.slane %v1037_v7, 6 }
  0xa0   : > { %v308_v53 = vld [vmem:[#allocation2] sm:$0xf]  ;;  %718 = vrot.lane.b32.xlu0 %v2385_v49, %s2256_s28  ;;  %v2400_v59 = vmul.bf16 %v2388_v52, %v498_v51  ;;  %v716_v14 = vrot.slane %v702_v3, %v2363_v15  ;;  %v717_v31 = vcombine.high %v2385_v49, %v2385_v49 }
  0xa1   : > { %v2396_v57 = vld [vmem:[#allocation2] sm:$0x3f]  ;;  %v357_v58 = vmul.bf16 %v2367_v33, %v308_v53  ;;  %379 = vrot.lane.b32.xlu1 %v370_v56, %s2257_s29  ;;  %v378_v60 = vcombine.high %v370_v56, %v370_v56  ;;  %v377_v19 = vrot.slane %v363_v11, %v2363_v15  ;;  %v2436_v22 = vsel %vm1039_vm13, %v1038_v16, %v1037_v7 }
  0xa2   : > { %v965_v63 = vrot.slane %v2396_v57, %v2363_v15  ;;  %v2411_v2 = vrot.slane %v2400_v59, %v2363_v15  ;;  %v867_v4 = vld [vmem:[#allocation2] sm:$0x3f]  ;;  %v958_v35 = vcombine.high %v2396_v57, %v2396_v57  ;;  %v533_v36 = vcombine.high %v2400_v59, %v2400_v59 }
  0xa3   : > { %v446_v62 = vrot.slane %v357_v58, %v2363_v15  ;;  %v2419_v8 = vld [vmem:[#allocation2 + $0x6] sm:$0x3f]  ;;  %v610_v12 = vld [vmem:[#allocation2] sm:$0x3f]  ;;  %v2424_v13 = vmul.bf16 %v2414_v5, %v867_v4 }
  0xa4   : > { %381 = vrot.lane.b32.xlu0 %v378_v60, %s2257_s29  ;;  %v1151_v9 = vrot.slane %v2419_v8, %v2363_v15  ;;  %v617_v18 = vmul.bf16 %v2428_v17, %v610_v12  ;;  %v1035_v23 = vld [vmem:[#allocation2] sm:$0x3f]  ;;  %v973_v28 = vcombine.high %v965_v63, %v965_v63  ;;  %v972_v38 = vrot.slane %v958_v35, %v2363_v15  ;;  %v1277_v40 = vld [vmem:[#allocation2 + $0x6] sm:$0x3f] }
  0xa5   : > { %v447_v0 = vcombine.high %v446_v62, %v446_v62  ;;  %v452_v1 = vsel %vm251_vm0, %v446_v62, 0  ;;  %974 = vrot.lane.b32.xlu1 %v965_v63, %s2258_s9  ;;  %v885_v21 = vrot.slane %v2424_v13, %v2363_v15  ;;  %v779_v25 = vld [vmem:[#allocation2] sm:$0x3f]  ;;  %v1042_v27 = vmul.bf16 %v2436_v22, %v1035_v23  ;;  %v1358_v54 = vld [vmem:[#allocation2 + $0x6] sm:$0x3f] }
  0xa6   : > { %v628_v24 = vrot.slane %v617_v18, %v2363_v15  ;;  %v786_v30 = vmul.bf16 %v2442_v26, %v779_v25  ;;  %v1159_v37 = vcombine.high %v1151_v9, %v1151_v9  ;;  %v547_v39 = vrot.slane %v533_v36, %v2363_v15  ;;  %v1439_v55 = vld [vmem:[#allocation2 + $0x6] sm:$0x3f]  ;;  %v1123_v35 = vld [vmem:[%s2774_s4] sm:$0xf] }
  0xa7   : > { %2055 = vmatprep.subr.msk.bf16.mxu1 %vm251_vm0, %v447_v0  ;;  %v1053_v32 = vrot.slane %v1042_v27, %v2363_v15  ;;  %v621_v41 = vcombine.high %v617_v18, %v617_v18  ;;  %v548_v42 = vcombine.high %v2411_v2, %v2411_v2  ;;  %v1278_v44 = vmul.bf16 %v1277_v40, %v2388_v52  ;;  %v1600_v63 = vld [vmem:[#allocation2 + $0x6] sm:$0x3f] }
  0xa8   : > { %458 = vmatpush1.bf16.msra.mxu1 %v452_v1  ;;  %549 = vrot.lane.b32.xlu0 %v2411_v2, %s2259_s10  ;;  %v797_v34 = vrot.slane %v786_v30, %v2363_v15  ;;  %v636_v43 = vcombine.high %v628_v24, %v628_v24  ;;  %v1144_v46 = vcombine.high %v2419_v8, %v2419_v8  ;;  %v1519_v3 = vld [vmem:[#allocation2 + $0x6] sm:$0x3f] }
  0xa9   : > { %1160 = vrot.lane.b32.xlu1 %v1151_v9, %s2257_s29  ;;  %v635_v45 = vrot.slane %v621_v41, %v2363_v15  ;;  %v1289_v47 = vrot.slane %v1278_v44, %v2363_v15  ;;  %v790_v48 = vcombine.high %v786_v30, %v786_v30  ;;  %v878_v50 = vcombine.high %v2424_v13, %v2424_v13  ;;  %v1761_v23 = vld [vmem:[#allocation2 + $0x6] sm:$0x3f] }
  0xaa   : > { %v1158_v49 = vrot.slane %v1144_v46, %v2363_v15  ;;  %v805_v51 = vcombine.high %v797_v34, %v797_v34  ;;  %v893_v56 = vcombine.high %v885_v21, %v885_v21  ;;  %v1359_v57 = vmul.bf16 %v1358_v54, %v2428_v17  ;;  %v1958_v36 = vld [vmem:[%s2775_s5] sm:$0xff] }
  0xab   : > { %2056 = vmatmul.mubr.msk.bf16.vlgmr.msra.gmra.mrb[0].mxu1 %vm388_vm10, %v358_v29  ;;  %v804_v52 = vrot.slane %v790_v48, %v2363_v15  ;;  %v892_v53 = vrot.slane %v878_v50, %v2363_v15  ;;  %v1046_v58 = vcombine.high %v1042_v27, %v1042_v27  ;;  %v1450_v59 = vrot.slane %v1439_v55, %v2363_v15 }
  0xac   : > { %722 = vrot.lane.b32.xlu0 %v716_v14, %s2256_s28  ;;  %687 = vmatprep.mubr.bf16.mxu1 %v2249_v10  ;;  %v1370_v60 = vrot.slane %v1359_v57, %v2363_v15  ;;  %v1443_v62 = vcombine.high %v1439_v55, %v1439_v55  ;;  %v1061_v0 = vcombine.high %v1053_v32, %v1053_v32 }
  0xad   : > { %383 = vrot.lane.b32.xlu1 %v377_v19, %s2257_s29  ;;  %v1060_v61 = vrot.slane %v1046_v58, %v2363_v15  ;;  %v1601_v2 = vmul.bf16 %v1600_v63, %v2414_v5  ;;  %v1458_v4 = vcombine.high %v1450_v59, %v1450_v59  ;;  %v1520_v6 = vmul.bf16 %v1519_v3, %v2442_v26  ;;  %v1681_v5 = vld [vmem:[#allocation2 + $0x6] sm:$0x3f] }
  0xae   : > { %v1457_v1 = vrot.slane %v1443_v62, %v2363_v15  ;;  %v1282_v8 = vcombine.high %v1278_v44, %v1278_v44  ;;  %v1297_v12 = vcombine.high %v1289_v47, %v1289_v47  ;;  %v1363_v13 = vcombine.high %v1359_v57, %v1359_v57 }
  0xaf   : > { %v1612_v7 = vrot.slane %v1601_v2, %v2363_v15  ;;  %v1531_v9 = vrot.slane %v1520_v6, %v2363_v15  ;;  %v1378_v14 = vcombine.high %v1370_v60, %v1370_v60  ;;  %v1692_v16 = vrot.slane %v1681_v5, %v2363_v15 }
  0xb0   : > { %894 = vrot.lane.b32.xlu0 %v885_v21, %s2254_s20  ;;  %v1296_v11 = vrot.slane %v1282_v8, %v2363_v15  ;;  %v1377_v17 = vrot.slane %v1363_v13, %v2363_v15  ;;  %v1524_v19 = vcombine.high %v1520_v6, %v1520_v6  ;;  %v1605_v21 = vcombine.high %v1601_v2, %v1601_v2  ;;  %v2057_v2 = vld [vmem:[%s2772_s2 + $0x8] sm:$0x3]  ;;  %v2063_v13 = vld [vmem:[%s2772_s2 + $0x10] sm:$0x3] }
  0xb1   : > { %637 = vrot.lane.b32.xlu1 %v628_v24, %s2260_s13  ;;  %v1700_v18 = vcombine.high %v1692_v16, %v1692_v16  ;;  %v1539_v20 = vcombine.high %v1531_v9, %v1531_v9  ;;  %v1762_v25 = vmul.bf16 %v1761_v23, %v2436_v22  ;;  %v1620_v27 = vcombine.high %v1612_v7, %v1612_v7  ;;  %v1136_v23 = vld [vmem:[#allocation2 + $0x6] sm:$0xf] }
  0xb2   : > { %v1538_v24 = vrot.slane %v1524_v19, %v2363_v15  ;;  %v1619_v26 = vrot.slane %v1605_v21, %v2363_v15  ;;  %v2066_v21 = vld [vmem:[%s2772_s2 + $0x14] sm:$0x3] }
  0xb3   : > { %v1766_v29 = vcombine.high %v1762_v25, %v1762_v25  ;;  %v1773_v30 = vrot.slane %v1762_v25, %v2363_v15 }
  0xb4   : > { %976 = vrot.lane.b32.xlu0 %v973_v28, %s2258_s9  ;;  %v1685_v28 = vcombine.high %v1681_v5, %v1681_v5 }
  0xb5   : > { %720 = vrot.lane.b32.xlu1 %v717_v31, %s2256_s28  ;;  %v1781_v22 = vcombine.high %v1773_v30, %v1773_v30 }
  0xb6   : > { %v1699_v31 = vrot.slane %v1685_v28, %v2363_v15 }
  0xb8   : > { %1062 = vrot.lane.b32.xlu0 %v1053_v32, %s2261_s14  ;;  %v1780_v32 = vrot.slane %v1766_v29, %v2363_v15 }
  0xb9   : > { %806 = vrot.lane.b32.xlu1 %v797_v34, %s2262_s15  ;;  %v2105_v34 = vld [vmem:[%s2774_s4 + $0x4] sm:$0xf] }
  0xbc   : > { %1162 = vrot.lane.b32.xlu0 %v1159_v37, %s2257_s29 }
  0xbd   : > { %978 = vrot.lane.b32.xlu1 %v972_v38, %s2258_s9 }
  0xc0   : > { %553 = vrot.lane.b32.xlu0 %v547_v39, %s2259_s10 }
  0xc1   : > { %551 = vrot.lane.b32.xlu1 %v548_v42, %s2259_s10 }
  0xc4   : > { %639 = vrot.lane.b32.xlu0 %v636_v43, %s2260_s13 }
  0xc5   : > { %641 = vrot.lane.b32.xlu1 %v635_v45, %s2260_s13 }
  0xc8   : > { %1298 = vrot.lane.b32.xlu0 %v1289_v47, %s2259_s10 }
  0xc9   : > { %1164 = vrot.lane.b32.xlu1 %v1158_v49, %s2257_s29  ;;  %v2052_v49 = vld [vmem:[%s2772_s2 + $0x4] sm:$0x3] }
  0xcc   : > { %808 = vrot.lane.b32.xlu0 %v805_v51, %s2262_s15 }
  0xcd   : > { %810 = vrot.lane.b32.xlu1 %v804_v52, %s2262_s15 }
  0xd0   : > { %898 = vrot.lane.b32.xlu0 %v892_v53, %s2254_s20 }
  0xd1   : > { %896 = vrot.lane.b32.xlu1 %v893_v56, %s2254_s20 }
  0xd4   : > { %1459 = vrot.lane.b32.xlu0 %v1450_v59, %s2256_s28 }
  0xd5   : > { %1379 = vrot.lane.b32.xlu1 %v1370_v60, %s2260_s13 }
  0xd8   : > { %1066 = vrot.lane.b32.xlu0 %v1060_v61, %s2261_s14 }
  0xd9   : > { %1064 = vrot.lane.b32.xlu1 %v1061_v0, %s2261_s14 }
  0xdc   : > { %1463 = vrot.lane.b32.xlu0 %v1457_v1, %s2256_s28 }
  0xdd   : > { %1461 = vrot.lane.b32.xlu1 %v1458_v4, %s2256_s28  ;;  %s2728_s28 = scalar_lea.hbm %s2776_s6, %s2117_s17 }
  0xe0   : > { %1621 = vrot.lane.b32.xlu0 %v1612_v7, %s2254_s20 }
  0xe1   : > { %1540 = vrot.lane.b32.xlu1 %v1531_v9, %s2262_s15  ;;  %v2060_v9 = vld [vmem:[%s2772_s2 + $0xc] sm:$0x3] }
  0xe4   : > { %1302 = vrot.lane.b32.xlu0 %v1296_v11, %s2259_s10 }
  0xe5   : > { %1300 = vrot.lane.b32.xlu1 %v1297_v12, %s2259_s10 }
  0xe8   : > { %1381 = vrot.lane.b32.xlu0 %v1378_v14, %s2260_s13 }
  0xe9   : > { %1383 = vrot.lane.b32.xlu1 %v1377_v17, %s2260_s13 }
  0xec   : > { %1703 = vrot.lane.b32.xlu0 %v1700_v18, %s2258_s9 }
  0xed   : > { %1701 = vrot.lane.b32.xlu1 %v1692_v16, %s2258_s9 }
  0xf0   : > { %1542 = vrot.lane.b32.xlu0 %v1539_v20, %s2262_s15 }
  0xf1   : > { %1544 = vrot.lane.b32.xlu1 %v1538_v24, %s2262_s15  ;;  %s242_s15 = sand.u32 1, %s2237_s22  }
  0xf2   : > { %s2046_s16 = sshll.u32 %s242_s15, 4  ;;  %s1969_s25 = scalar_lea.sflag [#allocation4], %s242_s15 }
  0xf3   : > { %s244_s18 = scalar_lea.vmem [#allocation3], %s2046_s16 }
  0xf4   : > { %1625 = vrot.lane.b32.xlu0 %v1619_v26, %s2254_s20  ;;  %s1983_s19 = sshll.u32 %s244_s18, 4  ;;  %s2730_s19 = int_to_ptr.vmem [resolvable:$true] %s1983_s19 }
  0xf5   : > { %1623 = vrot.lane.b32.xlu1 %v1620_v27, %s2254_s20  ;;  %s2183_s29 = scalar_lea.vmem %s2730_s19, 256 }
  0xf6   : > { %p2184_p11 = scmp.ne.s32.totalorder %s2730_s19, %s2183_s29 }
  0xf8   : > { %1782 = vrot.lane.b32.xlu0 %v1773_v30, %s2261_s14  ;;  %v1137_v30 = vmul.bf16 %v1136_v23, %v2367_v33  ;;  %p2185_p12 = pnand %p2184_p11, %p2337_p5 }
  0xf9   : > { %1705 = vrot.lane.b32.xlu1 %v1699_v31, %s2258_s9  ;;  %s2263_s9 = smov [#allocation3]  }
  0xfa   : > { %v1225_v33 = vrot.slane %v1137_v30, %v2363_v15  ;;  %v2102_v30 = vld [vmem:[%s2772_s2 + $0x22] sm:$0x3]  ;;  %p2186_p13 = pneg %p2185_p12  ;;  %s2187_s10 = sshll.u32 %s2263_s9, 4  ;;  %s2188_s10 = int_to_ptr.vmem [resolvable:$false] %s2187_s10 }
  0xfb   : > { %s2189_s11 = scalar_lea.vmem %s2188_s10, 512  ;;  %p2190_p0 = scmp.lt.s32.totalorder %s2730_s19, %s2188_s10 }
  0xfc   : > { %1786 = vrot.lane.b32.xlu0 %v1780_v32, %s2261_s14  ;;  %v2069_v32 = vld [vmem:[%s2772_s2 + $0x18] sm:$0x3]  ;;  %p2191_p1 = scmp.lt.s32.totalorder %s2189_s11, %s2183_s29 }
  0xfd   : > { %1784 = vrot.lane.b32.xlu1 %v1781_v22, %s2261_s14 }
  0xfe   : > { %p2192_p2 = por %p2191_p1, %p2190_p0 }
 0x100   : > { %1846 = vperm.xlu0 %2174, %v2105_v34   ;;  %p2193_p3 = pnand %p2192_p2, %p2186_p13 }
 0x101   : > { %1126 = vperm.xlu1 %2173, %v1123_v35  }
 0x105   : > { %1961 = vperm.xlu1 %2173, %v1958_v36   ;;  %v2072_v36 = vld [vmem:[%s2772_s2 + $0x1c] sm:$0x3] }
 0x112   : > { %v719_v37 = vpop.permute.xlu0 %718 }
 0x113   : > { %v380_v38 = vpop.permute.xlu1 %379 }
 0x116   : > { %v382_v39 = vpop.permute.xlu0 %381 }
 0x117   : > { %v2539_v40 = vpop.permute.xlu1 %974  ;;  %v386_v44 = vsel %vm385_vm15, %v380_v38, %v382_v39 }
 0x118   : > { %v393_v48 = vsel %vm251_vm0, %v386_v44, 0 }
 0x11a   : > { %v550_v41 = vpop.permute.xlu0 %549 }
 0x11b   : > { %v2541_v42 = vpop.permute.xlu1 %1160 }
 0x11e   : > { %v723_v43 = vpop.permute.xlu0 %722 }
 0x11f   : > { %v384_v45 = vpop.permute.xlu1 %383 }
 0x120   : > { %v387_v47 = vsel %vm385_vm15, %v382_v39, %v384_v45 }
 0x121   : > { %2053 = vmatprep.subr.msk.bf16.mxu0 %vm251_vm0, %v387_v47  ;;  %v2079_v47 = vld [vmem:[%s2772_s2 + $0x6] sm:$0x3] }
 0x122   : > { %v2544_v46 = vpop.permute.xlu0 %894  ;;  %399 = vmatpush1.bf16.msra.mxu0 %v393_v48 }
 0x123   : > { %v638_v50 = vpop.permute.xlu1 %637 }
 0x125   : > { %2054 = vmatmul.mubr.msk.bf16.vlgmr.msra.gmra.mrb[0].mxu0 %vm388_vm10, %v2052_v49 }
 0x126   : > { %v977_v51 = vpop.permute.xlu0 %976  ;;  %599 = vmatprep.mubr.bf16.mxu0 %v2249_v10 }
 0x127   : > { %v721_v52 = vpop.permute.xlu1 %720  ;;  %v981_v19 = vsel %vm980_vm5, %v2539_v40, %v977_v51 }
 0x128   : > { %v725_v63 = vsel %vm724_vm2, %v719_v37, %v721_v52  ;;  %v726_v0 = vsel %vm724_vm2, %v721_v52, %v723_v43  ;;  %v987_v28 = vsel %vm251_vm0, %v981_v19, 0  ;;  %v2075_v43 = vld [vmem:[%s2772_s2 + $0x20] sm:$0x3]  ;;  %v2096_v19 = vld [vmem:[%s2772_s2 + $0x1a] sm:$0x3] }
 0x129   : > { %v731_v7 = vsel %vm251_vm0, %v725_v63, 0 }
 0x12a   : > { %v2554_v53 = vpop.permute.xlu0 %1062 }
 0x12b   : > { %v807_v54 = vpop.permute.xlu1 %806 }
 0x12e   : > { %v2556_v55 = vpop.permute.xlu0 %1162 }
 0x12f   : > { %v979_v56 = vpop.permute.xlu1 %978  ;;  %v1166_v35 = vsel %vm385_vm15, %v2541_v42, %v2556_v55  ;;  %v1226_v42 = vcombine.high %v1225_v33, %v1225_v33 }
 0x130   : > { %v982_v20 = vsel %vm980_vm5, %v977_v51, %v979_v56 }
 0x132   : > { %v554_v57 = vpop.permute.xlu0 %553 }
 0x133   : > { %v552_v58 = vpop.permute.xlu1 %551 }
 0x134   : > { %v556_v59 = vsel %vm555_vm1, %v550_v41, %v552_v58  ;;  %v557_v60 = vsel %vm555_vm1, %v552_v58, %v554_v57  ;;  %v1172_v41 = vsel %vm251_vm0, %v1166_v35, 0 }
 0x135   : > { %v562_v62 = vsel %vm251_vm0, %v556_v59, 0  ;;  %2058 = vmatprep.subr.msk.bf16.mxu0 %vm251_vm0, %v557_v60  ;;  %v2084_v59 = vld [vmem:[%s2772_s2 + $0xa] sm:$0x3] }
 0x136   : > { %v640_v61 = vpop.permute.xlu0 %639  ;;  %568 = vmatpush1.bf16.msra.mxu0 %v562_v62 }
 0x137   : > { %v644_v1 = vsel %vm643_vm3, %v638_v50, %v640_v61  ;;  %v642_v3 = vpop.permute.xlu1 %641  ;;  %2064 = vmatprep.subr.msk.bf16.mxu0 %vm251_vm0, %v726_v0  ;;  %v2078_v50 = vld [vmem:[%s2772_s2 + $0x2] sm:$0x3] }
 0x138   : > { %v645_v4 = vsel %vm643_vm3, %v640_v61, %v642_v3  ;;  %v650_v8 = vsel %vm251_vm0, %v644_v1, 0  ;;  %v2087_v1 = vld [vmem:[%s2772_s2 + $0xe] sm:$0x3] }
 0x139   : > { %2059 = vmatmul.mubr.msk.bf16.vlgmr.msra.gmra.mrb[4].mxu0 %vm388_vm10, %v2057_v2  ;;  %2061 = vmatprep.subr.msk.bf16.mxu1 %vm251_vm0, %v645_v4 }
 0x13a   : > { %v2570_v6 = vpop.permute.xlu0 %1298  ;;  %656 = vmatpush1.bf16.msra.mxu1 %v650_v8  ;;  %737 = vmatpush1.bf16.msra.mxu0 %v731_v7 }
 0x13b   : > { %v1165_v11 = vpop.permute.xlu1 %1164  ;;  %768 = vmatprep.mubr.bf16.mxu0 %v2249_v10 }
 0x13c   : > { %v1167_v31 = vsel %vm385_vm15, %v2556_v55, %v1165_v11 }
 0x13d   : > { %2062 = vmatmul.mubr.msk.bf16.vlgmr.msra.gmra.mrb[4].mxu1 %vm388_vm10, %v2060_v9 }
 0x13e   : > { %v809_v5 = vpop.permute.xlu0 %808  ;;  %856 = vmatprep.mubr.bf16.mxu1 %v2249_v10 }
 0x13f   : > { %v813_v12 = vsel %vm812_vm4, %v807_v54, %v809_v5  ;;  %v811_v14 = vpop.permute.xlu1 %810 }
 0x140   : > { %v814_v16 = vsel %vm812_vm4, %v809_v5, %v811_v14  ;;  %v819_v18 = vsel %vm251_vm0, %v813_v12, 0  ;;  %v2093_v5 = vld [vmem:[%s2772_s2 + $0x16] sm:$0x3] }
 0x141   : > { %2065 = vmatmul.mubr.msk.bf16.vlgmr.msra.gmra.mrb[8].mxu0 %vm388_vm10, %v2063_v13  ;;  %2067 = vmatprep.subr.msk.bf16.mxu1 %vm251_vm0, %v814_v16 }
 0x142   : > { %v899_v17 = vpop.permute.xlu0 %898  ;;  %825 = vmatpush1.bf16.msra.mxu1 %v819_v18  ;;  %943 = vmatprep.mubr.bf16.mxu0 %v2249_v10 }
 0x143   : > { %v897_v24 = vpop.permute.xlu1 %896  ;;  %2073 = vmatprep.subr.msk.bf16.mxu1 %vm251_vm0, %v982_v20 }
 0x144   : > { %v900_v25 = vsel %vm871_vm11, %v2544_v46, %v897_v24  ;;  %v901_v26 = vsel %vm871_vm11, %v897_v24, %v899_v17  ;;  %v1231_v46 = vsel %vm251_vm0, %v1225_v33, 0  ;;  %v2099_v24 = vld [vmem:[%s2772_s2 + $0x1e] sm:$0x3] }
 0x145   : > { %v906_v29 = vsel %vm251_vm0, %v900_v25, 0  ;;  %2068 = vmatmul.mubr.msk.bf16.vlgmr.msra.gmra.mrb[8].mxu1 %vm388_vm10, %v2066_v21  ;;  %2070 = vmatprep.subr.msk.bf16.mxu0 %vm251_vm0, %v901_v26 }
 0x146   : > { %v1460_v27 = vpop.permute.xlu0 %1459  ;;  %912 = vmatpush1.bf16.msra.mxu0 %v906_v29  ;;  %993 = vmatpush1.bf16.msra.mxu1 %v987_v28 }
 0x147   : > { %v1380_v22 = vpop.permute.xlu1 %1379  ;;  %2080 = vmatprep.subr.msk.bf16.mxu1 %vm251_vm0, %v1167_v31  ;;  %1024 = vmatprep.mubr.bf16.mxu1 %v2249_v10 }
 0x149   : > { %2071 = vmatmul.mubr.msk.bf16.vlgmr.msra.gmra.mrb[12].mxu0 %vm388_vm10, %v2069_v32 }
 0x14a   : > { %v1067_v34 = vpop.permute.xlu0 %1066  ;;  %1112 = vmatprep.mubr.bf16.mxu0 %v2249_v10 }
 0x14b   : > { %v1065_v37 = vpop.permute.xlu1 %1064 }
 0x14c   : > { %v1069_v38 = vsel %vm1068_vm6, %v2554_v53, %v1065_v37  ;;  %v1070_v39 = vsel %vm1068_vm6, %v1065_v37, %v1067_v34 }
 0x14d   : > { %v1075_v15 = vsel %vm251_vm0, %v1069_v38, 0  ;;  %2074 = vmatmul.mubr.msk.bf16.vlgmr.msra.gmra.mrb[12].mxu1 %vm388_vm10, %v2072_v36  ;;  %2076 = vmatprep.subr.msk.bf16.mxu0 %vm251_vm0, %v1070_v39 }
 0x14e   : > { %v1464_v40 = vpop.permute.xlu0 %1463  ;;  %1178 = vmatpush1.bf16.msra.mxu1 %v1172_v41  ;;  %1081 = vmatpush1.bf16.msra.mxu0 %v1075_v15 }
 0x14f   : > { %v1462_v44 = vpop.permute.xlu1 %1461  ;;  %2082 = vmatprep.subr.msk.bf16.mxu0 %vm251_vm0, %v1226_v42  ;;  %1209 = vmatprep.mubr.bf16.mxu1 %v2249_v10 }
 0x150   : > { %v1465_v56 = vsel %vm724_vm2, %v1460_v27, %v1462_v44  ;;  %v1466_v57 = vsel %vm724_vm2, %v1462_v44, %v1464_v40 }
 0x151   : > { %2077 = vmatmul.mubr.msk.bf16.vlgmr.msra.gmra.mrb[16].mxu0 %vm388_vm10, %v2075_v43  ;;  %v1471_v63 = vsel %vm251_vm0, %v1465_v56, 0 }
 0x152   : > { %v1622_v45 = vpop.permute.xlu0 %1621  ;;  %1237 = vmatpush1.bf16.msra.mxu0 %v1231_v46  ;;  %1268 = vmatprep.mubr.bf16.mxu0 %v2249_v10 }
 0x153   : > { %v1541_v48 = vpop.permute.xlu1 %1540 }
 0x155   : > { %2081 = vmatmul.mubr.msk.bf16.vlgmr.msra.gmra.mrb[16].mxu1 %vm388_vm10, %v2079_v47 }
 0x156   : > { %v1303_v49 = vpop.permute.xlu0 %1302  ;;  %1347 = vmatprep.mubr.bf16.mxu1 %v2249_v10 }
 0x157   : > { %v1301_v51 = vpop.permute.xlu1 %1300 }
 0x158   : > { %v1304_v52 = vsel %vm555_vm1, %v2570_v6, %v1301_v51  ;;  %v1305_v53 = vsel %vm555_vm1, %v1301_v51, %v1303_v49  ;;  %v2090_v6 = vld [vmem:[%s2772_s2 + $0x12] sm:$0x3] }
 0x159   : > { %v1310_v55 = vsel %vm251_vm0, %v1304_v52, 0  ;;  %2083 = vmatmul.mubr.msk.bf16.vlgmr.msra.gmra.mrb[20].mxu0 %vm388_vm10, %v2078_v50  ;;  %2085 = vmatprep.subr.msk.bf16.mxu1 %vm251_vm0, %v1305_v53 }
 0x15a   : > { %v1382_v54 = vpop.permute.xlu0 %1381  ;;  %1316 = vmatpush1.bf16.msra.mxu1 %v1310_v55  ;;  %1428 = vmatprep.mubr.bf16.mxu0 %v2249_v10 }
 0x15b   : > { %v1385_v58 = vsel %vm643_vm3, %v1380_v22, %v1382_v54  ;;  %v1384_v60 = vpop.permute.xlu1 %1383  ;;  %2091 = vmatprep.subr.msk.bf16.mxu1 %vm251_vm0, %v1466_v57 }
 0x15c   : > { %v1386_v61 = vsel %vm643_vm3, %v1382_v54, %v1384_v60  ;;  %v1391_v0 = vsel %vm251_vm0, %v1385_v58, 0 }
 0x15d   : > { %2086 = vmatmul.mubr.msk.bf16.vlgmr.msra.gmra.mrb[20].mxu1 %vm388_vm10, %v2084_v59  ;;  %2088 = vmatprep.subr.msk.bf16.mxu0 %vm251_vm0, %v1386_v61 }
 0x15e   : > { %v1704_v62 = vpop.permute.xlu0 %1703  ;;  %1397 = vmatpush1.bf16.msra.mxu0 %v1391_v0  ;;  %1477 = vmatpush1.bf16.msra.mxu1 %v1471_v63 }
 0x15f   : > { %v1702_v2 = vpop.permute.xlu1 %1701  ;;  %1508 = vmatprep.mubr.bf16.mxu1 %v2249_v10 }
 0x160   : > { %v1707_v18 = vsel %vm980_vm5, %v1702_v2, %v1704_v62 }
 0x161   : > { %2089 = vmatmul.mubr.msk.bf16.vlgmr.msra.gmra.mrb[24].mxu0 %vm388_vm10, %v2087_v1  ;;  %v1713_v23 = vsel %vm251_vm0, %v1707_v18, 0 }
 0x162   : > { %v1543_v3 = vpop.permute.xlu0 %1542  ;;  %1589 = vmatprep.mubr.bf16.mxu0 %v2249_v10 }
 0x163   : > { %v1546_v4 = vsel %vm812_vm4, %v1541_v48, %v1543_v3  ;;  %v1545_v7 = vpop.permute.xlu1 %1544 }
 0x164   : > { %v1547_v8 = vsel %vm812_vm4, %v1543_v3, %v1545_v7  ;;  %v1552_v11 = vsel %vm251_vm0, %v1546_v4, 0 }
 0x165   : > { %2092 = vmatmul.mubr.msk.bf16.vlgmr.msra.gmra.mrb[24].mxu1 %vm388_vm10, %v2090_v6  ;;  %2094 = vmatprep.subr.msk.bf16.mxu0 %vm251_vm0, %v1547_v8 }
 0x166   : > { %v1626_v9 = vpop.permute.xlu0 %1625  ;;  %1558 = vmatpush1.bf16.msra.mxu0 %v1552_v11  ;;  %1670 = vmatprep.mubr.bf16.mxu1 %v2249_v10 }
 0x167   : > { %v1624_v12 = vpop.permute.xlu1 %1623 }
 0x168   : > { %v1627_v13 = vsel %vm871_vm11, %v1622_v45, %v1624_v12  ;;  %v1628_v14 = vsel %vm871_vm11, %v1624_v12, %v1626_v9 }
 0x169   : > { %v1633_v16 = vsel %vm251_vm0, %v1627_v13, 0  ;;  %2095 = vmatmul.mubr.msk.bf16.vlgmr.msra.gmra.mrb[28].mxu0 %vm388_vm10, %v2093_v5  ;;  %2097 = vmatprep.subr.msk.bf16.mxu1 %vm251_vm0, %v1628_v14 }
 0x16a   : > { %v1783_v17 = vpop.permute.xlu0 %1782  ;;  %1639 = vmatpush1.bf16.msra.mxu1 %v1633_v16  ;;  %1750 = vmatprep.mubr.bf16.mxu0 %v2249_v10 }
 0x16b   : > { %v1706_v20 = vpop.permute.xlu1 %1705 }
 0x16c   : > { %v1708_v21 = vsel %vm980_vm5, %v1704_v62, %v1706_v20 }
 0x16d   : > { %2098 = vmatmul.mubr.msk.bf16.vlgmr.msra.gmra.mrb[28].mxu1 %vm388_vm10, %v2096_v19  ;;  %2100 = vmatprep.subr.msk.bf16.mxu0 %vm251_vm0, %v1708_v21 }
 0x16e   : > { %1719 = vmatpush1.bf16.msra.mxu0 %v1713_v23  ;;  %1831 = vmatprep.mubr.bf16.mxu1 %v2249_v10  ;;  %v1787_v25 = vpop.permute.xlu0 %1786 }
 0x16f   : > { %v1785_v26 = vpop.permute.xlu1 %1784 }
 0x170   : > { %v1788_v27 = vsel %vm1068_vm6, %v1783_v17, %v1785_v26  ;;  %v1789_v28 = vsel %vm1068_vm6, %v1785_v26, %v1787_v25 }
 0x171   : > { %v1794_v29 = vsel %vm251_vm0, %v1788_v27, 0  ;;  %2101 = vmatmul.mubr.msk.bf16.vlgmr.msra.gmra.mrb[32].mxu0 %vm388_vm10, %v2099_v24  ;;  %2103 = vmatprep.subr.msk.bf16.mxu1 %vm251_vm0, %v1789_v28 }
 0x172   : > { %1800 = vmatpush1.bf16.msra.mxu1 %v1794_v29  ;;  %1899 = vmatprep.mubr.bf16.mxu0 %v2249_v10 }
 0x175   : > { %2104 = vmatmul.mubr.msk.bf16.vlgmr.msra.gmra.mrb[32].mxu1 %vm388_vm10, %v2102_v30 }
 0x176   : > { %1949 = vmatprep.mubr.bf16.mxu1 %v2249_v10 }
 0x17e   : > { %v491_v31 = vpop.f32.mrb[0].mxu1 }
 0x17f   : > { %v493_v32 = vpop.f32.mrb[1].mxu1 }
 0x180   : > { %v495_v22 = vpop.f32.mrb[2].mxu1  ;;  %v1127_v12 = vpop.permute.xlu1 %1126 }
 0x181   : > { %v496_v34 = vpop.f32.mrb[3].mxu1 }
 0x1f8   : > { %v432_v33 = vpop.f32.mrb[0].mxu0 }
 0x1f9   : > { %v434_v35 = vpop.f32.mrb[1].mxu0  ;;  %v492_v36 = vadd.f32 %v491_v31, %v432_v33 }
 0x1fa   : > { %v436_v37 = vpop.f32.mrb[2].mxu0  ;;  %v494_v38 = vadd.f32 %v493_v32, %v434_v35 }
 0x1fb   : > { %v437_v39 = vpop.f32.mrb[3].mxu0 }
 0x20c   : > { %v601_v40 = vpop.f32.mrb[4].mxu0 }
 0x20d   : > { %v608_v41 = vadd.f32 %v601_v40, %v492_v36  ;;  %v603_v15 = vpop.f32.mrb[5].mxu0  ;;  %v1855_v36 = vld [vmem:[%s2773_s3] sm:$0xf] }
 0x20e   : > { %v609_v42 = vadd.f32 %v603_v15, %v494_v38  ;;  %v605_v43 = vpop.f32.mrb[6].mxu0 }
 0x20f   : > { %v606_v44 = vpop.f32.mrb[7].mxu0 }
 0x210   : > { %v689_v45 = vpop.f32.mrb[4].mxu1 }
 0x211   : > { %v696_v46 = vadd.f32 %v689_v45, %v608_v41  ;;  %v691_v47 = vpop.f32.mrb[5].mxu1 }
 0x212   : > { %v697_v10 = vadd.f32 %v691_v47, %v609_v42  ;;  %v693_v48 = vpop.f32.mrb[6].mxu1 }
 0x213   : > { %v694_v49 = vpop.f32.mrb[7].mxu1 }
 0x214   : > { %v770_v50 = vpop.f32.mrb[8].mxu0 }
 0x215   : > { %v777_v51 = vadd.f32 %v770_v50, %v696_v46  ;;  %v772_v52 = vpop.f32.mrb[9].mxu0 }
 0x216   : > { %v778_v53 = vadd.f32 %v772_v52, %v697_v10  ;;  %v774_v54 = vpop.f32.mrb[10].mxu0 }
 0x217   : > { %v775_v55 = vpop.f32.mrb[11].mxu0 }
 0x218   : > { %v858_v56 = vpop.f32.mrb[8].mxu1 }
 0x219   : > { %v865_v57 = vadd.f32 %v858_v56, %v777_v51  ;;  %v860_v58 = vpop.f32.mrb[9].mxu1 }
 0x21a   : > { %v866_v59 = vadd.f32 %v860_v58, %v778_v53  ;;  %v862_v60 = vpop.f32.mrb[10].mxu1 }
 0x21b   : > { %v863_v61 = vpop.f32.mrb[11].mxu1 }
 0x21c   : > { %v945_v62 = vpop.f32.mrb[12].mxu0 }
 0x21d   : > { %v952_v63 = vadd.f32 %v945_v62, %v865_v57  ;;  %v947_v0 = vpop.f32.mrb[13].mxu0 }
 0x21e   : > { %v953_v1 = vadd.f32 %v947_v0, %v866_v59  ;;  %v949_v2 = vpop.f32.mrb[14].mxu0 }
 0x21f   : > { %v950_v3 = vpop.f32.mrb[15].mxu0 }
 0x220   : > { %v1026_v4 = vpop.f32.mrb[12].mxu1 }
 0x221   : > { %v1033_v6 = vadd.f32 %v1026_v4, %v952_v63  ;;  %v1028_v7 = vpop.f32.mrb[13].mxu1 }
 0x222   : > { %v1034_v8 = vadd.f32 %v1028_v7, %v953_v1  ;;  %v1030_v9 = vpop.f32.mrb[14].mxu1 }
 0x223   : > { %v1031_v11 = vpop.f32.mrb[15].mxu1  ;;  %v1847_v9 = vpop.permute.xlu0 %1846 }
 0x224   : > { %v1114_v5 = vpop.f32.mrb[16].mxu0 }
 0x225   : > { %v1121_v13 = vadd.f32 %v1114_v5, %v1033_v6  ;;  %v1116_v14 = vpop.f32.mrb[17].mxu0 }
 0x226   : > { %v1122_v16 = vadd.f32 %v1116_v14, %v1034_v8  ;;  %v1118_v17 = vpop.f32.mrb[18].mxu0 }
 0x227   : > { %v1129_v18 = vadd.f32 %v1127_v12, %v1121_v13  ;;  %v1119_v19 = vpop.f32.mrb[19].mxu0 }
 0x228   : > { %v1130_v20 = vadd.f32 %v1127_v12, %v1122_v16  ;;  %v1211_v21 = vpop.f32.mrb[16].mxu1 }
 0x229   : > { %v1131_v23 = vmax.f32 %v1129_v18, 0.0  ;;  %v1213_v24 = vpop.f32.mrb[17].mxu1 }
 0x22a   : > { %v1132_v25 = vmax.f32 %v1130_v20, 0.0  ;;  %v1215_v26 = vpop.f32.mrb[18].mxu1 }
 0x22b   : > { %v1133_v27 = vpack.c.bf16 %v1131_v23, %v1131_v23  ;;  %v1216_v28 = vpop.f32.mrb[19].mxu1 }
 0x22c   : > { %v1134_v29 = vpack.c.bf16 %v1132_v25, %v1132_v25  ;;  %v1270_v30 = vpop.f32.mrb[20].mxu0 }
 0x22d   : > { %v1271_v31 = vadd.f32 %v1270_v30, %v1211_v21  ;;  %v1272_v32 = vpop.f32.mrb[21].mxu0  ;;  %v1912_v22 = vsel %vm251_vm0, %v1133_v27, 0 }
 0x22e   : > { %v1273_v34 = vadd.f32 %v1272_v32, %v1213_v24  ;;  %v1274_v33 = vpop.f32.mrb[22].mxu0  ;;  %2109 = vmatprep.subr.msk.bf16.mxu1 %vm251_vm0, %v1134_v29  ;;  %v2106_v24 = vld [vmem:[%s2773_s3 + $0x4] sm:$0xf]  ;;  %v1962_v32 = vpop.permute.xlu1 %1961 }
 0x22f   : > { %v1275_v35 = vpop.f32.mrb[23].mxu0  ;;  %1918 = vmatpush1.bf16.msra.mxu1 %v1912_v22 }
 0x230   : > { %v1349_v37 = vpop.f32.mrb[20].mxu1 }
 0x231   : > { %v1356_v38 = vadd.f32 %v1349_v37, %v1271_v31  ;;  %v1351_v39 = vpop.f32.mrb[21].mxu1 }
 0x232   : > { %v1357_v40 = vadd.f32 %v1351_v39, %v1273_v34  ;;  %v1353_v41 = vpop.f32.mrb[22].mxu1  ;;  %2110 = vmatmul.mubr.msk.bf16.vlgmr.msra.gmra.mrb[36].mxu1 %vm388_vm10, %v1855_v36 }
 0x233   : > { %v1354_v15 = vpop.f32.mrb[23].mxu1 }
 0x234   : > { %v1430_v42 = vpop.f32.mrb[24].mxu0 }
 0x235   : > { %v1437_v43 = vadd.f32 %v1430_v42, %v1356_v38  ;;  %v1432_v44 = vpop.f32.mrb[25].mxu0 }
 0x236   : > { %v1438_v45 = vadd.f32 %v1432_v44, %v1357_v40  ;;  %v1434_v46 = vpop.f32.mrb[26].mxu0 }
 0x237   : > { %v1435_v47 = vpop.f32.mrb[27].mxu0 }
 0x238   : > { %v1510_v10 = vpop.f32.mrb[24].mxu1 }
 0x239   : > { %v1517_v48 = vadd.f32 %v1510_v10, %v1437_v43  ;;  %v1512_v49 = vpop.f32.mrb[25].mxu1 }
 0x23a   : > { %v1518_v50 = vadd.f32 %v1512_v49, %v1438_v45  ;;  %v1514_v51 = vpop.f32.mrb[26].mxu1 }
 0x23b   : > { %v1515_v52 = vpop.f32.mrb[27].mxu1 }
 0x23c   : > { %v1591_v53 = vpop.f32.mrb[28].mxu0 }
 0x23d   : > { %v1598_v54 = vadd.f32 %v1591_v53, %v1517_v48  ;;  %v1593_v55 = vpop.f32.mrb[29].mxu0 }
 0x23e   : > { %v1599_v56 = vadd.f32 %v1593_v55, %v1518_v50  ;;  %v1595_v57 = vpop.f32.mrb[30].mxu0 }
 0x23f   : > { %v1596_v58 = vpop.f32.mrb[31].mxu0 }
 0x240   : > { %v1672_v59 = vpop.f32.mrb[28].mxu1 }
 0x241   : > { %v1679_v60 = vadd.f32 %v1672_v59, %v1598_v54  ;;  %v1674_v61 = vpop.f32.mrb[29].mxu1 }
 0x242   : > { %v1680_v62 = vadd.f32 %v1674_v61, %v1599_v56  ;;  %v1676_v63 = vpop.f32.mrb[30].mxu1 }
 0x243   : > { %v1677_v0 = vpop.f32.mrb[31].mxu1 }
 0x244   : > { %v1752_v1 = vpop.f32.mrb[32].mxu0 }
 0x245   : > { %v1759_v2 = vadd.f32 %v1752_v1, %v1679_v60  ;;  %v1754_v3 = vpop.f32.mrb[33].mxu0 }
 0x246   : > { %v1760_v4 = vadd.f32 %v1754_v3, %v1680_v62  ;;  %v1756_v6 = vpop.f32.mrb[34].mxu0 }
 0x247   : > { %v1757_v7 = vpop.f32.mrb[35].mxu0 }
 0x248   : > { %v1833_v8 = vpop.f32.mrb[32].mxu1 }
 0x249   : > { %v1840_v11 = vadd.f32 %v1833_v8, %v1759_v2  ;;  %v1835_v5 = vpop.f32.mrb[33].mxu1 }
 0x24a   : > { %v1841_v12 = vadd.f32 %v1835_v5, %v1760_v4  ;;  %v1837_v13 = vpop.f32.mrb[34].mxu1 }
 0x24b   : > { %v1849_v14 = vadd.f32 %v1847_v9, %v1840_v11  ;;  %v1838_v16 = vpop.f32.mrb[35].mxu1 }
 0x24c   : > { %v1850_v17 = vadd.f32 %v1847_v9, %v1841_v12 }
 0x24d   : > { %v1851_v18 = vmax.f32 %v1849_v14, 0.0 }
 0x24e   : > { %v1852_v19 = vmax.f32 %v1850_v17, 0.0 }
 0x24f   : > { %v1853_v20 = vpack.c.bf16 %v1851_v18, %v1851_v18 }
 0x250   : > { %v1854_v21 = vpack.c.bf16 %v1852_v19, %v1852_v19 }
 0x251   : > { %v1862_v23 = vsel %vm251_vm0, %v1853_v20, 0 }
 0x252   : > { %2107 = vmatprep.subr.msk.bf16.mxu0 %vm251_vm0, %v1854_v21 }
 0x253   : > { %1868 = vmatpush1.bf16.msra.mxu0 %v1862_v23 }
 0x256   : > { %2108 = vmatmul.mubr.msk.bf16.vlgmr.msra.gmra.mrb[36].mxu0 %vm388_vm10, %v2106_v24 }
 0x305   : > { %v1951_v25 = vpop.f32.mrb[36].mxu1 }
 0x306   : > { %v1953_v26 = vpop.f32.mrb[37].mxu1 }
 0x307   : > { %v1955_v27 = vpop.f32.mrb[38].mxu1 }
 0x308   : > { %v1956_v28 = vpop.f32.mrb[39].mxu1 }
 0x329   : > { %v1901_v29 = vpop.f32.mrb[36].mxu0 }
 0x32a   : > { %v1952_v30 = vadd.f32 %v1951_v25, %v1901_v29  ;;  %v1903_v31 = vpop.f32.mrb[37].mxu0 }
 0x32b   : > { %v1954_v22 = vadd.f32 %v1953_v26, %v1903_v31  ;;  %v1905_v34 = vpop.f32.mrb[38].mxu0 }
 0x32c   : > { %v1964_v33 = vadd.f32 %v1962_v32, %v1952_v30  ;;  %v1906_v35 = vpop.f32.mrb[39].mxu0 }
 0x32d   : > { %v1965_v36 = vadd.f32 %v1962_v32, %v1954_v22 }
 0x32e   : > { %1966 = vst [vmem:[%s244_s18] sm:$0xff] %v1964_v33 }
 0x32f   : > { %1967 = vst [vmem:[%s244_s18 + $0x8] sm:$0xff] %v1965_v36 }
 0x330   : > { %2196 = shalt.err (!%p2193_p3)
}
 0x331   : > { %s2197_s12 = scalar_lea.hbm %s2728_s28, 256  ;;  %s2201_s15 = scalar_lea.hbm %s2776_s6, 512 }
 0x332   : > { %p2198_p4 = scmp.ne.s32.totalorder %s2728_s28, %s2197_s12  ;;  %p2202_p9 = scmp.lt.u32.totalorder %s2728_s28, %s2776_s6 }
 0x333   : > { %p2203_p10 = scmp.lt.u32.totalorder %s2201_s15, %s2197_s12  ;;  %p2205_p12 = scmp.lt.u32.totalorder %s2197_s12, %s2728_s28 }
 0x334   : > { %p2199_p7 = pnand %p2198_p4, %p2337_p5 }
 0x335   : > { %p2204_p11 = por %p2203_p10, %p2202_p9 }
 0x336   : > { %p2200_p8 = pneg %p2199_p7 }
 0x337   : > { %p2206_p13 = por %p2205_p12, %p2204_p11 }
 0x339   : > { %p2207_p0 = pnand %p2206_p13, %p2200_p8 }
 0x33b   : > { %2210 = shalt.err (!%p2207_p0)
}
 0x33c   : > { %2118 = dma.vmem_to_hbm [thread:$0]  (%p2337_p5), %s2730_s19, 256, %s2728_s28, %s1969_s25  }
 0x33d PF: > { %p2124_p1 = scmp.ge.s32.totalorder %s2245_s24, 2  ;;  %s1995_s18 = sand.u32 1, %s2233_s21  }
 0x33e   : > { %s1996_s20 = scalar_lea.sflag [#allocation4], %s1995_s18 }
 0x33f   : > { %p2121_p2 = pnand %p2124_p1, %p2341_p6 }
 0x341   : > { %2228 = dma.done.wait (!%p2121_p2), %s1996_s20, 256  }
 0x342   : > { %2230 = vsyncadd (!%p2121_p2), %s1996_s20, 4294967040  ;;  %p16_p3 = scmp.ge.s32.totalorder %s2324_s27, 4   ;;  %s2781_s21 = smov %s2237_s22 }
 0x343   : > { %s2782_s22 = smov %s2241_s23  ;;  %s2783_s23 = smov %s2335_s30 }
 0x344   : > { %s2784_s24 = smov %s2324_s27  ;;  %18 = sbr.rel (!%p16_p3) target bundleno = 3 (0x3), region = 99 }
 0x34b   :  { %2001 = vsyncpa [#allocation4], 1 }
 0x34c   :  { %2003 = vsyncpa [#allocation4 + $0x1], 1 }

</bundles_post_ra>
